<compile_context>
chip_gen: v6e
topology: v6e:2x2x1
jax: 0.10.0
libtpu: 0.0.40
codegen_flags: <defaults>
</compile_context>

<pallas_src>
import functools
import math

import jax
import jax.numpy as jnp
from jax import lax
from jax.experimental import pallas as pl
from jax.experimental.pallas import tpu as pltpu


def _attn_kernel(x_ref, wqkv_ref, bqkv_ref, wp_ref, bp_ref, mask_ref,
                 o_ref, qkv_sc, y_sc, *,
                 n_head, head_dim, seq_len, block_batch, head_stride):
    """One grid step = `block_batch` batch elements, presented as a flat row slab.

    x_ref    : (Bb*T, C)        bf16 input rows
    wqkv_ref : (C, n_head*P)    bf16 fused head-major q/k/v weight, (in, out) layout
    bqkv_ref : (1, n_head*P)    f32 fused bias (zero in pad columns)
    wp_ref   : (C, C)           bf16 output-projection weight, (in, out) layout
    bp_ref   : (1, C)           f32 bias
    mask_ref : (T, T)           bf16 additive block-causal mask (0 / -1e30)
    o_ref    : (Bb*T, C)        output rows (x.dtype)
    qkv_sc   : (Bb*T, n_head*P) bf16 scratch holding the fused projection
    y_sc     : (Bb*T, C)        bf16 scratch for per-head attention outputs
    """
    T = seq_len
    hd = head_dim
    P = head_stride                      # per-head column stride (128-lane aligned)
    scale = 1.0 / math.sqrt(hd)

    # Fused QKV projection over the whole row slab: one (Bb*T, C) @ (C, n_head*P)
    # MXU matmul with f32 accumulation; a single bf16 cast as it lands in scratch.
    qkv = jnp.dot(x_ref[...], wqkv_ref[...], preferred_element_type=jnp.float32)
    qkv_sc[...] = (qkv + bqkv_ref[...]).astype(jnp.bfloat16)

    bias = mask_ref[...]                 # (T, T) bf16; promoted to f32 on the add below

    # contract the last dims of (T, hd) x (T, hd) -> (T, T); no explicit transpose
    dim_qk = (((1,), (1,)), ((), ()))

    def per_batch(bb, carry):
        r0 = bb * T
        if T % 8 == 0:                   # static check; sublane-alignment hint
            r0 = pl.multiple_of(r0, 8)
        # Head loop stays unrolled: n_head is small and each head's chunk starts at a
        # static, 128-lane-aligned offset in the padded head-major layout.
        for h in range(n_head):
            c0 = h * P
            qh = qkv_sc[pl.ds(r0, T), c0:c0 + hd]
            kh = qkv_sc[pl.ds(r0, T), c0 + hd:c0 + 2 * hd]
            vh = qkv_sc[pl.ds(r0, T), c0 + 2 * hd:c0 + 3 * hd]

            s = lax.dot_general(qh, kh, dim_qk,
                                preferred_element_type=jnp.float32) * scale + bias

            # numerically-stable softmax in f32; the divide goes to the EUP slot
            m = jnp.max(s, axis=-1, keepdims=True)
            p = jnp.exp(s - m)
            p = p * pl.reciprocal(jnp.sum(p, axis=-1, keepdims=True), approx=True)

            yh = jnp.dot(p.astype(jnp.bfloat16), vh,
                         preferred_element_type=jnp.float32)        # (T, hd) f32
            y_sc[pl.ds(r0, T), h * hd:(h + 1) * hd] = yh.astype(jnp.bfloat16)
        return carry

    lax.fori_loop(0, block_batch, per_batch, 0)

    # Output projection over all Bb*T rows at once (bf16 in, f32 acc).
    out = jnp.dot(y_sc[...], wp_ref[...],
                  preferred_element_type=jnp.float32) + bp_ref[...]
    o_ref[...] = out.astype(o_ref.dtype)


def _vmem_bytes_estimate(M, T, C, Wtot, out_itemsize):
    """Rough per-step VMEM bytes: single-buffered residents, double-buffered x/out
    blocks, the two scratches, and the main f32 temporaries."""
    bf16, f32 = 2, 4
    resident = (C * Wtot + C * C + T * T) * bf16 + (Wtot + C) * f32
    io_blocks = 2 * M * C * bf16 + 2 * M * C * out_itemsize
    scratch = M * Wtot * bf16 + M * C * bf16
    temps = M * Wtot * f32 + 2 * T * T * f32 + M * C * f32
    return resident + io_blocks + scratch + temps


def _choose_block_batch(B, T, C, Wtot, out_itemsize, *, min_steps, target_rows,
                        vmem_cap):
    """Largest Bb dividing B whose row slab fits target_rows and the VMEM budget,
    keeping at least `min_steps` grid steps (v7x: 2 so both TensorCores get work)."""
    best = 1
    for bb in range(1, B + 1):
        if B % bb:
            continue
        if B // bb < min_steps:
            continue
        M = bb * T
        if bb != B and M % 8 != 0:        # block row-count must be sublane-divisible
            continue
        if M > max(target_rows, T):
            continue
        if _vmem_bytes_estimate(M, T, C, Wtot, out_itemsize) > vmem_cap:
            continue
        best = bb
    return best


def _tpu_is_v7():
    try:
        kind = jax.devices()[0].device_kind.lower()
    except Exception:
        return False
    return "v7" in kind


def causal_cross_conditional_self_attention(x, params, *, n_head, block_batch=None):
    """x: (B, T, C) with T divisible by 3. Returns (B, T, C) in x.dtype."""
    B, T, C = x.shape
    assert T % 3 == 0 and C % n_head == 0
    t = T // 3
    hd = C // n_head

    wk, bk = params["key"]
    wq, bq = params["query"]
    wv, bv = params["value"]
    wp, bp = params["proj"]

    # ---- wrapper-side layout plumbing (one-time, no per-step cost) --------------
    # Head-major fused QKV weight, (in, out) layout, each head's [q|k|v] chunk padded
    # so it starts on a 128-lane boundary.  Pad columns / pad bias are zero.
    P = ((3 * hd + 127) // 128) * 128
    Wtot = n_head * P
    pad = P - 3 * hd

    def _heads(w):                      # (out, in) Linear weight -> (in, n_head, hd)
        return w.T.reshape(C, n_head, hd)

    qkv_h = jnp.concatenate([_heads(wq), _heads(wk), _heads(wv)], axis=-1)
    if pad:
        qkv_h = jnp.pad(qkv_h, ((0, 0), (0, 0), (0, pad)))
    wqkv_t = qkv_h.reshape(C, Wtot).astype(jnp.bfloat16)

    b_h = jnp.concatenate([bq.reshape(n_head, hd), bk.reshape(n_head, hd),
                           bv.reshape(n_head, hd)], axis=-1)
    if pad:
        b_h = jnp.pad(b_h, ((0, 0), (0, pad)))
    bqkv = b_h.reshape(1, Wtot).astype(jnp.float32)

    wp_t = wp.T.astype(jnp.bfloat16)                                   # (C, C)
    bp2 = bp.reshape(1, C).astype(jnp.float32)

    # Block-causal additive mask (allowed iff col % t <= row % t), bf16 resident;
    # the score+bias add stays in f32 so exp() still underflows to exactly 0.
    row = jnp.arange(T)[:, None]
    col = jnp.arange(T)[None, :]
    mask_bias = jnp.where((col % t) <= (row % t), 0.0, -1e30).astype(jnp.bfloat16)

    # ---- per-generation tiling policy --------------------------------------------
    is_v7 = _tpu_is_v7()
    phys_vmem = (64 << 20) if is_v7 else (128 << 20)
    vmem_cap = int(phys_vmem * 0.6)          # headroom for compiler-internal scratch
    min_steps = 2 if (is_v7 and B >= 2) else 1   # single-TC chips want fat single steps
    target_rows = 512 if is_v7 else 1024
    out_itemsize = jnp.dtype(x.dtype).itemsize

    if block_batch is None:
        block_batch = _choose_block_batch(B, T, C, Wtot, out_itemsize,
                                          min_steps=min_steps,
                                          target_rows=target_rows,
                                          vmem_cap=vmem_cap)
    Bb = block_batch
    assert B % Bb == 0
    M = Bb * T

    est = _vmem_bytes_estimate(M, T, C, Wtot, out_itemsize)
    vmem_limit = int(min(phys_vmem * 0.9, max(est * 1.5, 32 << 20)))

    # Flatten batch*seq into rows so the two big projections see a tall M dimension
    # (the in-head matmuls are K=hd-underfilled on the 256-deep MXU; M is the lever).
    x_flat = x.reshape(B * T, C).astype(jnp.bfloat16)

    kernel = functools.partial(_attn_kernel, n_head=n_head, head_dim=hd,
                               seq_len=T, block_batch=Bb, head_stride=P)

    resident = functools.partial(pl.BlockSpec, index_map=lambda b: (0, 0),
                                 pipeline_mode=pl.Buffered(1))

    out_flat = pl.pallas_call(
        kernel,
        out_shape=jax.ShapeDtypeStruct((B * T, C), x.dtype),
        grid_spec=pltpu.PrefetchScalarGridSpec(
            num_scalar_prefetch=0,
            grid=(B // Bb,),
            in_specs=[
                pl.BlockSpec((M, C), lambda b: (b, 0)),   # x rows for this step
                resident((C, Wtot)),                      # fused qkv weight (single-buffered)
                resident((1, Wtot)),                      # fused qkv bias
                resident((C, C)),                         # proj weight
                resident((1, C)),                         # proj bias
                resident((T, T)),                         # additive mask (bf16)
            ],
            out_specs=pl.BlockSpec((M, C), lambda b: (b, 0)),
            scratch_shapes=[pltpu.VMEM((M, Wtot), jnp.bfloat16),   # qkv scratch
                            pltpu.VMEM((M, C), jnp.bfloat16)],     # per-head outputs
        ),
        compiler_params=pltpu.CompilerParams(
            dimension_semantics=("parallel",),
            vmem_limit_bytes=vmem_limit),
    )(x_flat, wqkv_t, bqkv, wp_t, bp2, mask_bias)

    return out_flat.reshape(B, T, C)


def _reference(x, params, *, n_head):
    """Pure-JAX (f32) reference mirroring the PyTorch forward (eval mode)."""
    B, T, C = x.shape
    t = T // 3
    hd = C // n_head

    def lin(v, w, b):
        return v @ w.T + b

    k = lin(x, *params["key"]).reshape(B, T, n_head, hd).transpose(0, 2, 1, 3)
    q = lin(x, *params["query"]).reshape(B, T, n_head, hd).transpose(0, 2, 1, 3)
    v = lin(x, *params["value"]).reshape(B, T, n_head, hd).transpose(0, 2, 1, 3)

    att = jnp.einsum("bhqd,bhkd->bhqk", q, k) * (1.0 / math.sqrt(hd))
    tril = jnp.tril(jnp.ones((t, t)))
    mask = jnp.tile(tril, (3, 3))[None, None]
    att = jnp.where(mask == 0, -jnp.inf, att)
    att = jax.nn.softmax(att, axis=-1)
    y = jnp.einsum("bhqk,bhkd->bhqd", att, v)
    y = y.transpose(0, 2, 1, 3).reshape(B, T, C)
    return lin(y, *params["proj"])


def _init_params(key, n_embd):
    ks = jax.random.split(key, 8)

    def linear(kw, kb):
        w = jax.random.normal(kw, (n_embd, n_embd), jnp.float32) * 0.02
        b = jax.random.normal(kb, (n_embd,), jnp.float32) * 0.02
        return w, b

    return {
        "key":   linear(ks[0], ks[1]),
        "query": linear(ks[2], ks[3]),
        "value": linear(ks[4], ks[5]),
        "proj":  linear(ks[6], ks[7]),
    }


if __name__ == "__main__":
    # small config: n_embd=32, n_head=4, T = 3 * 8 = 24, batch=4
    B, t, n_head, n_embd = 4, 8, 4, 32
    T = 3 * t

    root = jax.random.PRNGKey(0)
    kx, kp = jax.random.split(root)
    x = jax.random.normal(kx, (B, T, n_embd), jnp.float32)
    params = _init_params(kp, n_embd)

    y = causal_cross_conditional_self_attention(x, params, n_head=n_head)
    y = jax.block_until_ready(y)

    y_ref = _reference(x, params, n_head=n_head)
    assert y.shape == (B, T, n_embd)
    # bf16 MXU operands + approximate reciprocal => small drift vs the f32 reference.
    assert jnp.allclose(y, y_ref, atol=1e-2, rtol=1e-2), "mismatch vs JAX reference"

    print("KERNEL_OK")
</pallas_src>

<mosaic_0001>
module attributes {stable_mosaic.version = 11 : i64} {
  func.func @_attn_kernel(%arg0: i32, %arg1: memref<96x32xbf16, #tpu.memory_space<vmem>>, %arg2: memref<32x512xbf16, #tpu.memory_space<vmem>>, %arg3: memref<1x512xf32, #tpu.memory_space<vmem>>, %arg4: memref<32x32xbf16, #tpu.memory_space<vmem>>, %arg5: memref<1x32xf32, #tpu.memory_space<vmem>>, %arg6: memref<24x24xbf16, #tpu.memory_space<vmem>>, %arg7: memref<96x32xf32, #tpu.memory_space<vmem>>, %arg8: memref<96x512xbf16, #tpu.memory_space<vmem>>, %arg9: memref<96x32xbf16, #tpu.memory_space<vmem>>) attributes {dimension_semantics = [#tpu.dimension_semantics<parallel>], iteration_bounds = array<i64: 1>, scalar_prefetch = 0 : i64, scratch_operands = 2 : i64, tpu.core_type = #tpu.core_type<tc>, window_params = [{transform_indices = @transform_0, window_bounds = array<i64: 96, 32>}, {pipeline_mode = #tpu.pipeline_mode<synchronous>, transform_indices = @transform_1, window_bounds = array<i64: 32, 512>}, {pipeline_mode = #tpu.pipeline_mode<synchronous>, transform_indices = @transform_2, window_bounds = array<i64: 1, 512>}, {pipeline_mode = #tpu.pipeline_mode<synchronous>, transform_indices = @transform_3, window_bounds = array<i64: 32, 32>}, {pipeline_mode = #tpu.pipeline_mode<synchronous>, transform_indices = @transform_4, window_bounds = array<i64: 1, 32>}, {pipeline_mode = #tpu.pipeline_mode<synchronous>, transform_indices = @transform_5, window_bounds = array<i64: 24, 24>}, {transform_indices = @transform_6, window_bounds = array<i64: 96, 32>}]} {
    %c0 = arith.constant 0 : index
    %c0_0 = arith.constant 0 : index
    %0 = vector.load %arg1[%c0, %c0_0] : memref<96x32xbf16, #tpu.memory_space<vmem>>, vector<96x32xbf16>
    %c0_1 = arith.constant 0 : index
    %c0_2 = arith.constant 0 : index
    %1 = vector.load %arg2[%c0_1, %c0_2] : memref<32x512xbf16, #tpu.memory_space<vmem>>, vector<32x512xbf16>
    %cst = arith.constant dense<0.000000e+00> : vector<96x512xf32>
    %2 = tpu.matmul %0, %1, %cst {dimension_numbers = #tpu.dot_dimension_numbers<[1], [0], [0], [1], [0, 0, 1, 1], [], []>} : vector<96x32xbf16>, vector<32x512xbf16>, vector<96x512xf32> -> vector<96x512xf32>
    %c0_3 = arith.constant 0 : index
    %c0_4 = arith.constant 0 : index
    %3 = vector.load %arg3[%c0_3, %c0_4] : memref<1x512xf32, #tpu.memory_space<vmem>>, vector<1x512xf32>
    %4 = vector.broadcast %3 : vector<1x512xf32> to vector<96x512xf32>
    %5 = arith.addf %2, %4 : vector<96x512xf32>
    %6 = arith.truncf %5 : vector<96x512xf32> to vector<96x512xbf16>
    %c0_5 = arith.constant 0 : index
    %c0_6 = arith.constant 0 : index
    %7 = vector.load %arg8[%c0_5, %c0_6] : memref<96x512xbf16, #tpu.memory_space<vmem>>, vector<96x512xbf16>
    tpu.vector_store %arg8[%c0_5, %c0_6], %6 {strides = array<i32>} : memref<96x512xbf16, #tpu.memory_space<vmem>>, vector<96x512xbf16>,
    %c0_7 = arith.constant 0 : index
    %c0_8 = arith.constant 0 : index
    %8 = vector.load %arg6[%c0_7, %c0_8] : memref<24x24xbf16, #tpu.memory_space<vmem>>, vector<24x24xbf16>
    %c0_i32 = arith.constant 0 : i32
    %c4_i32 = arith.constant 4 : i32
    %9 = arith.addi %c0_i32, %c4_i32 : i32
    %c1_i32 = arith.constant 1 : i32
    scf.for %arg10 = %c0_i32 to %9 step %c1_i32  : i32 {
      %c24_i32 = arith.constant 24 : i32
      %17 = arith.muli %arg10, %c24_i32 : i32
      %18 = tpu.assume_multiple %17, 8 : i32
      %19 = arith.index_cast %18 : i32 to index
      %c0_19 = arith.constant 0 : index
      %20 = vector.load %arg8[%19, %c0_19] : memref<96x512xbf16, #tpu.memory_space<vmem>>, vector<24x8xbf16>
      %21 = arith.index_cast %18 : i32 to index
      %c8 = arith.constant 8 : index
      %22 = vector.load %arg8[%21, %c8] : memref<96x512xbf16, #tpu.memory_space<vmem>>, vector<24x8xbf16>
      %23 = arith.index_cast %18 : i32 to index
      %c16 = arith.constant 16 : index
      %24 = vector.load %arg8[%23, %c16] : memref<96x512xbf16, #tpu.memory_space<vmem>>, vector<24x8xbf16>
      %cst_20 = arith.constant dense<0.000000e+00> : vector<24x24xf32>
      %25 = tpu.matmul %20, %22, %cst_20 {dimension_numbers = #tpu.dot_dimension_numbers<[1], [1], [0], [0], [0, 0, 1, 0], [], []>} : vector<24x8xbf16>, vector<24x8xbf16>, vector<24x24xf32> -> vector<24x24xf32>
      %cst_21 = arith.constant 0.353553385 : f32
      %26 = vector.broadcast %cst_21 : f32 to vector<24x24xf32>
      %27 = arith.mulf %25, %26 : vector<24x24xf32>
      %28 = arith.extf %8 : vector<24x24xbf16> to vector<24x24xf32>
      %29 = arith.addf %27, %28 : vector<24x24xf32>
      %cst_22 = arith.constant dense<0xFF800000> : vector<24xf32>
      %30 = vector.multi_reduction <maximumf>, %29, %cst_22 [1] : vector<24x24xf32> to vector<24xf32>
      %31 = vector.shape_cast %30 : vector<24xf32> to vector<24x1xf32>
      %32 = vector.broadcast %31 : vector<24x1xf32> to vector<24x24xf32>
      %33 = arith.subf %29, %32 : vector<24x24xf32>
      %34 = math.exp %33 : vector<24x24xf32>
      %cst_23 = arith.constant dense<0.000000e+00> : vector<24xf32>
      %35 = vector.multi_reduction <add>, %34, %cst_23 [1] : vector<24x24xf32> to vector<24xf32>
      %36 = vector.shape_cast %35 : vector<24xf32> to vector<24x1xf32>
      %37 = tpu.reciprocal %36 {approx = true} : vector<24x1xf32> -> vector<24x1xf32>
      %38 = vector.broadcast %37 : vector<24x1xf32> to vector<24x24xf32>
      %39 = arith.mulf %34, %38 : vector<24x24xf32>
      %40 = arith.truncf %39 : vector<24x24xf32> to vector<24x24xbf16>
      %cst_24 = arith.constant dense<0.000000e+00> : vector<24x8xf32>
      %41 = tpu.matmul %40, %24, %cst_24 {dimension_numbers = #tpu.dot_dimension_numbers<[1], [0], [0], [1], [0, 0, 1, 1], [], []>} : vector<24x24xbf16>, vector<24x8xbf16>, vector<24x8xf32> -> vector<24x8xf32>
      %42 = arith.truncf %41 : vector<24x8xf32> to vector<24x8xbf16>
      %43 = arith.index_cast %18 : i32 to index
      %c0_25 = arith.constant 0 : index
      %44 = vector.load %arg9[%43, %c0_25] : memref<96x32xbf16, #tpu.memory_space<vmem>>, vector<24x8xbf16>
      tpu.vector_store %arg9[%43, %c0_25], %42 {strides = array<i32>} : memref<96x32xbf16, #tpu.memory_space<vmem>>, vector<24x8xbf16>,
      %45 = arith.index_cast %18 : i32 to index
      %c128 = arith.constant 128 : index
      %46 = vector.load %arg8[%45, %c128] : memref<96x512xbf16, #tpu.memory_space<vmem>>, vector<24x8xbf16>
      %47 = arith.index_cast %18 : i32 to index
      %c136 = arith.constant 136 : index
      %48 = vector.load %arg8[%47, %c136] : memref<96x512xbf16, #tpu.memory_space<vmem>>, vector<24x8xbf16>
      %49 = arith.index_cast %18 : i32 to index
      %c144 = arith.constant 144 : index
      %50 = vector.load %arg8[%49, %c144] : memref<96x512xbf16, #tpu.memory_space<vmem>>, vector<24x8xbf16>
      %cst_26 = arith.constant dense<0.000000e+00> : vector<24x24xf32>
      %51 = tpu.matmul %46, %48, %cst_26 {dimension_numbers = #tpu.dot_dimension_numbers<[1], [1], [0], [0], [0, 0, 1, 0], [], []>} : vector<24x8xbf16>, vector<24x8xbf16>, vector<24x24xf32> -> vector<24x24xf32>
      %cst_27 = arith.constant 0.353553385 : f32
      %52 = vector.broadcast %cst_27 : f32 to vector<24x24xf32>
      %53 = arith.mulf %51, %52 : vector<24x24xf32>
      %54 = arith.extf %8 : vector<24x24xbf16> to vector<24x24xf32>
      %55 = arith.addf %53, %54 : vector<24x24xf32>
      %cst_28 = arith.constant dense<0xFF800000> : vector<24xf32>
      %56 = vector.multi_reduction <maximumf>, %55, %cst_28 [1] : vector<24x24xf32> to vector<24xf32>
      %57 = vector.shape_cast %56 : vector<24xf32> to vector<24x1xf32>
      %58 = vector.broadcast %57 : vector<24x1xf32> to vector<24x24xf32>
      %59 = arith.subf %55, %58 : vector<24x24xf32>
      %60 = math.exp %59 : vector<24x24xf32>
      %cst_29 = arith.constant dense<0.000000e+00> : vector<24xf32>
      %61 = vector.multi_reduction <add>, %60, %cst_29 [1] : vector<24x24xf32> to vector<24xf32>
      %62 = vector.shape_cast %61 : vector<24xf32> to vector<24x1xf32>
      %63 = tpu.reciprocal %62 {approx = true} : vector<24x1xf32> -> vector<24x1xf32>
      %64 = vector.broadcast %63 : vector<24x1xf32> to vector<24x24xf32>
      %65 = arith.mulf %60, %64 : vector<24x24xf32>
      %66 = arith.truncf %65 : vector<24x24xf32> to vector<24x24xbf16>
      %cst_30 = arith.constant dense<0.000000e+00> : vector<24x8xf32>
      %67 = tpu.matmul %66, %50, %cst_30 {dimension_numbers = #tpu.dot_dimension_numbers<[1], [0], [0], [1], [0, 0, 1, 1], [], []>} : vector<24x24xbf16>, vector<24x8xbf16>, vector<24x8xf32> -> vector<24x8xf32>
      %68 = arith.truncf %67 : vector<24x8xf32> to vector<24x8xbf16>
      %69 = arith.index_cast %18 : i32 to index
      %c8_31 = arith.constant 8 : index
      %70 = vector.load %arg9[%69, %c8_31] : memref<96x32xbf16, #tpu.memory_space<vmem>>, vector<24x8xbf16>
      tpu.vector_store %arg9[%69, %c8_31], %68 {strides = array<i32>} : memref<96x32xbf16, #tpu.memory_space<vmem>>, vector<24x8xbf16>,
      %71 = arith.index_cast %18 : i32 to index
      %c256 = arith.constant 256 : index
      %72 = vector.load %arg8[%71, %c256] : memref<96x512xbf16, #tpu.memory_space<vmem>>, vector<24x8xbf16>
      %73 = arith.index_cast %18 : i32 to index
      %c264 = arith.constant 264 : index
      %74 = vector.load %arg8[%73, %c264] : memref<96x512xbf16, #tpu.memory_space<vmem>>, vector<24x8xbf16>
      %75 = arith.index_cast %18 : i32 to index
      %c272 = arith.constant 272 : index
      %76 = vector.load %arg8[%75, %c272] : memref<96x512xbf16, #tpu.memory_space<vmem>>, vector<24x8xbf16>
      %cst_32 = arith.constant dense<0.000000e+00> : vector<24x24xf32>
      %77 = tpu.matmul %72, %74, %cst_32 {dimension_numbers = #tpu.dot_dimension_numbers<[1], [1], [0], [0], [0, 0, 1, 0], [], []>} : vector<24x8xbf16>, vector<24x8xbf16>, vector<24x24xf32> -> vector<24x24xf32>
      %cst_33 = arith.constant 0.353553385 : f32
      %78 = vector.broadcast %cst_33 : f32 to vector<24x24xf32>
      %79 = arith.mulf %77, %78 : vector<24x24xf32>
      %80 = arith.extf %8 : vector<24x24xbf16> to vector<24x24xf32>
      %81 = arith.addf %79, %80 : vector<24x24xf32>
      %cst_34 = arith.constant dense<0xFF800000> : vector<24xf32>
      %82 = vector.multi_reduction <maximumf>, %81, %cst_34 [1] : vector<24x24xf32> to vector<24xf32>
      %83 = vector.shape_cast %82 : vector<24xf32> to vector<24x1xf32>
      %84 = vector.broadcast %83 : vector<24x1xf32> to vector<24x24xf32>
      %85 = arith.subf %81, %84 : vector<24x24xf32>
      %86 = math.exp %85 : vector<24x24xf32>
      %cst_35 = arith.constant dense<0.000000e+00> : vector<24xf32>
      %87 = vector.multi_reduction <add>, %86, %cst_35 [1] : vector<24x24xf32> to vector<24xf32>
      %88 = vector.shape_cast %87 : vector<24xf32> to vector<24x1xf32>
      %89 = tpu.reciprocal %88 {approx = true} : vector<24x1xf32> -> vector<24x1xf32>
      %90 = vector.broadcast %89 : vector<24x1xf32> to vector<24x24xf32>
      %91 = arith.mulf %86, %90 : vector<24x24xf32>
      %92 = arith.truncf %91 : vector<24x24xf32> to vector<24x24xbf16>
      %cst_36 = arith.constant dense<0.000000e+00> : vector<24x8xf32>
      %93 = tpu.matmul %92, %76, %cst_36 {dimension_numbers = #tpu.dot_dimension_numbers<[1], [0], [0], [1], [0, 0, 1, 1], [], []>} : vector<24x24xbf16>, vector<24x8xbf16>, vector<24x8xf32> -> vector<24x8xf32>
      %94 = arith.truncf %93 : vector<24x8xf32> to vector<24x8xbf16>
      %95 = arith.index_cast %18 : i32 to index
      %c16_37 = arith.constant 16 : index
      %96 = vector.load %arg9[%95, %c16_37] : memref<96x32xbf16, #tpu.memory_space<vmem>>, vector<24x8xbf16>
      tpu.vector_store %arg9[%95, %c16_37], %94 {strides = array<i32>} : memref<96x32xbf16, #tpu.memory_space<vmem>>, vector<24x8xbf16>,
      %97 = arith.index_cast %18 : i32 to index
      %c384 = arith.constant 384 : index
      %98 = vector.load %arg8[%97, %c384] : memref<96x512xbf16, #tpu.memory_space<vmem>>, vector<24x8xbf16>
      %99 = arith.index_cast %18 : i32 to index
      %c392 = arith.constant 392 : index
      %100 = vector.load %arg8[%99, %c392] : memref<96x512xbf16, #tpu.memory_space<vmem>>, vector<24x8xbf16>
      %101 = arith.index_cast %18 : i32 to index
      %c400 = arith.constant 400 : index
      %102 = vector.load %arg8[%101, %c400] : memref<96x512xbf16, #tpu.memory_space<vmem>>, vector<24x8xbf16>
      %cst_38 = arith.constant dense<0.000000e+00> : vector<24x24xf32>
      %103 = tpu.matmul %98, %100, %cst_38 {dimension_numbers = #tpu.dot_dimension_numbers<[1], [1], [0], [0], [0, 0, 1, 0], [], []>} : vector<24x8xbf16>, vector<24x8xbf16>, vector<24x24xf32> -> vector<24x24xf32>
      %cst_39 = arith.constant 0.353553385 : f32
      %104 = vector.broadcast %cst_39 : f32 to vector<24x24xf32>
      %105 = arith.mulf %103, %104 : vector<24x24xf32>
      %106 = arith.extf %8 : vector<24x24xbf16> to vector<24x24xf32>
      %107 = arith.addf %105, %106 : vector<24x24xf32>
      %cst_40 = arith.constant dense<0xFF800000> : vector<24xf32>
      %108 = vector.multi_reduction <maximumf>, %107, %cst_40 [1] : vector<24x24xf32> to vector<24xf32>
      %109 = vector.shape_cast %108 : vector<24xf32> to vector<24x1xf32>
      %110 = vector.broadcast %109 : vector<24x1xf32> to vector<24x24xf32>
      %111 = arith.subf %107, %110 : vector<24x24xf32>
      %112 = math.exp %111 : vector<24x24xf32>
      %cst_41 = arith.constant dense<0.000000e+00> : vector<24xf32>
      %113 = vector.multi_reduction <add>, %112, %cst_41 [1] : vector<24x24xf32> to vector<24xf32>
      %114 = vector.shape_cast %113 : vector<24xf32> to vector<24x1xf32>
      %115 = tpu.reciprocal %114 {approx = true} : vector<24x1xf32> -> vector<24x1xf32>
      %116 = vector.broadcast %115 : vector<24x1xf32> to vector<24x24xf32>
      %117 = arith.mulf %112, %116 : vector<24x24xf32>
      %118 = arith.truncf %117 : vector<24x24xf32> to vector<24x24xbf16>
      %cst_42 = arith.constant dense<0.000000e+00> : vector<24x8xf32>
      %119 = tpu.matmul %118, %102, %cst_42 {dimension_numbers = #tpu.dot_dimension_numbers<[1], [0], [0], [1], [0, 0, 1, 1], [], []>} : vector<24x24xbf16>, vector<24x8xbf16>, vector<24x8xf32> -> vector<24x8xf32>
      %120 = arith.truncf %119 : vector<24x8xf32> to vector<24x8xbf16>
      %121 = arith.index_cast %18 : i32 to index
      %c24 = arith.constant 24 : index
      %122 = vector.load %arg9[%121, %c24] : memref<96x32xbf16, #tpu.memory_space<vmem>>, vector<24x8xbf16>
      tpu.vector_store %arg9[%121, %c24], %120 {strides = array<i32>} : memref<96x32xbf16, #tpu.memory_space<vmem>>, vector<24x8xbf16>,
    }
    %c4_i32_9 = arith.constant 4 : i32
    %c0_10 = arith.constant 0 : index
    %c0_11 = arith.constant 0 : index
    %10 = vector.load %arg9[%c0_10, %c0_11] : memref<96x32xbf16, #tpu.memory_space<vmem>>, vector<96x32xbf16>
    %c0_12 = arith.constant 0 : index
    %c0_13 = arith.constant 0 : index
    %11 = vector.load %arg4[%c0_12, %c0_13] : memref<32x32xbf16, #tpu.memory_space<vmem>>, vector<32x32xbf16>
    %cst_14 = arith.constant dense<0.000000e+00> : vector<96x32xf32>
    %12 = tpu.matmul %10, %11, %cst_14 {dimension_numbers = #tpu.dot_dimension_numbers<[1], [0], [0], [1], [0, 0, 1, 1], [], []>} : vector<96x32xbf16>, vector<32x32xbf16>, vector<96x32xf32> -> vector<96x32xf32>
    %c0_15 = arith.constant 0 : index
    %c0_16 = arith.constant 0 : index
    %13 = vector.load %arg5[%c0_15, %c0_16] : memref<1x32xf32, #tpu.memory_space<vmem>>, vector<1x32xf32>
    %14 = vector.broadcast %13 : vector<1x32xf32> to vector<96x32xf32>
    %15 = arith.addf %12, %14 : vector<96x32xf32>
    %c0_17 = arith.constant 0 : index
    %c0_18 = arith.constant 0 : index
    %16 = vector.load %arg7[%c0_17, %c0_18] : memref<96x32xf32, #tpu.memory_space<vmem>>, vector<96x32xf32>
    tpu.vector_store %arg7[%c0_17, %c0_18], %15 {strides = array<i32>} : memref<96x32xf32, #tpu.memory_space<vmem>>, vector<96x32xf32>,
    return
  }
  func.func @transform_0(%arg0: i32) -> (i32, i32) {
    %c0_i32 = arith.constant 0 : i32
    %c0_i32_0 = arith.constant 0 : i32
    return %arg0, %c0_i32 : i32, i32
  }
  func.func @transform_1(%arg0: i32) -> (i32, i32) {
    %c0_i32 = arith.constant 0 : i32
    %c0_i32_0 = arith.constant 0 : i32
    %c0_i32_1 = arith.constant 0 : i32
    return %c0_i32, %c0_i32_0 : i32, i32
  }
  func.func @transform_2(%arg0: i32) -> (i32, i32) {
    %c0_i32 = arith.constant 0 : i32
    %c0_i32_0 = arith.constant 0 : i32
    %c0_i32_1 = arith.constant 0 : i32
    return %c0_i32, %c0_i32_0 : i32, i32
  }
  func.func @transform_3(%arg0: i32) -> (i32, i32) {
    %c0_i32 = arith.constant 0 : i32
    %c0_i32_0 = arith.constant 0 : i32
    %c0_i32_1 = arith.constant 0 : i32
    return %c0_i32, %c0_i32_0 : i32, i32
  }
  func.func @transform_4(%arg0: i32) -> (i32, i32) {
    %c0_i32 = arith.constant 0 : i32
    %c0_i32_0 = arith.constant 0 : i32
    %c0_i32_1 = arith.constant 0 : i32
    return %c0_i32, %c0_i32_0 : i32, i32
  }
  func.func @transform_5(%arg0: i32) -> (i32, i32) {
    %c0_i32 = arith.constant 0 : i32
    %c0_i32_0 = arith.constant 0 : i32
    %c0_i32_1 = arith.constant 0 : i32
    return %c0_i32, %c0_i32_0 : i32, i32
  }
  func.func @transform_6(%arg0: i32) -> (i32, i32) {
    %c0_i32 = arith.constant 0 : i32
    %c0_i32_0 = arith.constant 0 : i32
    return %arg0, %c0_i32 : i32, i32
  }
}

</mosaic_0001>

<bundles_post_ra>
// kernel: tpu_custom_call.1
= control target key start
LH: loop header
LB: loop body
LE: loop exit
PB: predicated region body
PF: predicated region fallthrough
CT: control target
= control target key end

     0   :  { %11 = vsyncpa [#allocation5], 0  ;;  %s2411_s0 = inlined_call_operand.vmem [shape: bf16[96,32], index: 0, kind: input, shape index: {}]   ;;  %s2412_s1 = inlined_call_operand.vmem [shape: bf16[32,512], index: 1, kind: input, shape index: {}]   ;;  %s2413_s2 = inlined_call_operand.hbm [shape: f32[1,512], index: 2, kind: input, shape index: {}]   ;;  %s2414_s3 = inlined_call_operand.hbm [shape: bf16[32,32], index: 3, kind: input, shape index: {}]   ;;  %s2415_s4 = inlined_call_operand.vmem [shape: f32[1,32], index: 4, kind: input, shape index: {}]   ;;  %s2416_s5 = inlined_call_operand.hbm [shape: bf16[24,24], index: 5, kind: input, shape index: {}]   ;;  %s2417_s6 = inlined_call_operand.vmem [shape: f32[96,32], index: 6, kind: output, shape index: {}]  }
   0x1   :  { %12 = vsyncpa [#allocation7], 0  ;;  %s2014_s21 = smov [#allocation6]  }
   0x2   :  { %s32_s22 = sshll.u32 %s2014_s21, 4  ;;  %s33_s22 = int_to_ptr.vmem [resolvable:$true] %s32_s22 }
   0x3   :  { %s1950_s23 = scalar_lea.vmem %s33_s22, 256  ;;  %p1955_p1 = scmp.lt.s32.totalorder %s33_s22, %s33_s22 }
   0x4   :  { %p1951_p0 = scmp.ne.s32.totalorder %s33_s22, %s1950_s23  ;;  %p1956_p2 = scmp.lt.s32.totalorder %s1950_s23, %s1950_s23 }
   0x6   :  { %p1957_p3 = por %p1956_p2, %p1955_p1 }
   0x8   :  { %p1958_p4 = pnand %p1957_p3, %p1951_p0 }
   0xa   :  { %1961 = shalt.err (!%p1958_p4)
}
   0xb   :  { %s2015_s24 = smov 64   ;;  %s2016_s25 = smov 4  }
   0xc   :  { %38 = dma.hbm_to_vmem [thread:$0]  %s2414_s3, 256, %s33_s22, [#allocation7], %s2015_s24, %s2015_s24, %s2016_s25  }
   0xd   :  { %s2017_s28 = smov [#allocation4]   ;;  %s2018_s30 = smov [#allocation8]  }
   0xe   :  { %s23_s29 = sshll.u32 %s2017_s28, 4  ;;  %s46_s7 = sshll.u32 %s2018_s30, 4  ;;  %s24_s29 = int_to_ptr.vmem [resolvable:$true] %s23_s29  ;;  %s47_s7 = int_to_ptr.vmem [resolvable:$true] %s46_s7 }
   0xf   :  { %s1970_s8 = scalar_lea.vmem %s24_s29, 64  ;;  %p1975_p6 = scmp.lt.s32.totalorder %s24_s29, %s24_s29 }
  0x10   :  { %p1971_p5 = scmp.ne.s32.totalorder %s24_s29, %s1970_s8  ;;  %p1976_p7 = scmp.lt.s32.totalorder %s1970_s8, %s1970_s8 }
  0x12   :  { %p1977_p8 = por %p1976_p7, %p1975_p6 }
  0x14   :  { %p1978_p9 = pnand %p1977_p8, %p1971_p5 }
  0x16   :  { %1981 = shalt.err (!%p1978_p9)
}
  0x17   :  { %26 = dma.hbm_to_vmem [thread:$0]  %s2413_s2, 64, %s24_s29, [#allocation5]  }
  0x18   :  { %s1990_s11 = scalar_lea.vmem %s47_s7, 192  ;;  %p1995_p11 = scmp.lt.s32.totalorder %s47_s7, %s47_s7 }
  0x19   :  { %p1991_p10 = scmp.ne.s32.totalorder %s47_s7, %s1990_s11  ;;  %p1996_p12 = scmp.lt.s32.totalorder %s1990_s11, %s1990_s11 }
  0x1b   :  { %p1997_p13 = por %p1996_p12, %p1995_p11 }
  0x1d   :  { %p1998_p0 = pnand %p1997_p13, %p1991_p10 }
  0x1f   :  { %2001 = shalt.err (!%p1998_p0)
}
  0x20   :  { %52 = dma.hbm_to_vmem [thread:$0]  %s2416_s5, 192, %s47_s7, [#allocation7], %s2015_s24, %s2015_s24, %s2016_s25  }
  0x21   :  { %2006 = dma.done.wait [#allocation5], 64  }
  0x22   :  { %2007 = vsyncadd [#allocation5], 4294967232 }
  0x23   :  { %2008 = dma.done.wait [#allocation7], 448  }
  0x24   :  { %2009 = vsyncadd [#allocation7], 4294966848  ;;  %v2019_v0 = vmov 0   ;;  %v1702_v1 = vld [vmem:[#allocation8] sm:$0xff]   ;;  %v2069_v2 = vld [vmem:[#allocation8 + $0x8] sm:$0xf]  ;;  %v85_v19 = vlaneseq }
  0x25   :  { %226 = vmatprep.mubr.bf16.mxu0 %v2019_v0  ;;  %319 = vmatprep.mubr.bf16.mxu1 %v2019_v0  ;;  %v2071_v3 = vunpack.c.l.bf16 %v1702_v1  ;;  %v2073_v4 = vunpack.c.h.bf16 %v1702_v1  ;;  %v1860_v5 = vld [vmem:[%s2412_s1 + $0x24] ss:$16 sps:$4 sm:$0xff]   ;;  %v1862_v6 = vld [vmem:[%s2412_s1 + $0x2c] ss:$16 sps:$4 sm:$0xff]   ;;  %v1864_v7 = vld [vmem:[%s2412_s1 + $0x20] ss:$16 sps:$4 sm:$0xff]  }
  0x26   :  { %206 = vmatprep.subr.bf16.mxu0 %v1860_v5  ;;  %v1865_v8 = vld [vmem:[%s2412_s1 + $0x28] ss:$16 sps:$4 sm:$0xff]   ;;  %299 = vmatprep.subr.bf16.mxu1 %v1862_v6  ;;  %v1866_v9 = vld [vmem:[%s2412_s1 + $0x4] ss:$16 sps:$4 sm:$0xff]   ;;  %v1868_v10 = vld [vmem:[%s2412_s1 + $0xc] ss:$16 sps:$4 sm:$0xff]  }
  0x27   :  { %207 = vmatpush1.bf16.msra.mxu0 %v1864_v7  ;;  %300 = vmatpush1.bf16.msra.mxu1 %v1865_v8  ;;  %v1870_v11 = vld [vmem:[%s2412_s1] ss:$16 sps:$4 sm:$0xff]   ;;  %v1871_v12 = vld [vmem:[%s2412_s1 + $0x8] ss:$16 sps:$4 sm:$0xff]   ;;  %vm175_vm0 = vcmask 261120   ;;  %v86_v20 = vshrl.u32 %v85_v19, 7 }
  0x28   :  { %208 = vmatprep.subr.bf16.mxu0 %v1866_v9  ;;  %301 = vmatprep.subr.bf16.mxu1 %v1868_v10  ;;  %v1872_v13 = vld [vmem:[%s2411_s0] sm:$0xff]   ;;  %v1873_v14 = vld [vmem:[%s2411_s0 + $0x8] sm:$0xff]   ;;  %v1874_v15 = vld [vmem:[%s2411_s0 + $0x10] sm:$0xff]  }
  0x29   :  { %v1875_v16 = vld [vmem:[%s2411_s0 + $0x18] sm:$0xff]   ;;  %v1876_v17 = vld [vmem:[%s2411_s0 + $0x20] sm:$0xff]   ;;  %v1877_v18 = vld [vmem:[%s2411_s0 + $0x28] sm:$0xff]   ;;  %v87_v21 = vsub.s32 0, %v86_v20  ;;  %v91_v22 = vsub.s32 1, %v86_v20  ;;  %v95_v24 = vsub.s32 2, %v86_v20 }
  0x2a   :  { %v83_v23 = vld [vmem:[#allocation4] sm:$0xf]  ;;  %v99_v25 = vsub.s32 3, %v86_v20  ;;  %s2185_s0 = smov 0  }
  0x2b   :  { %209 = vmatpush1.bf16.msra.mxu0 %v1870_v11  ;;  %302 = vmatpush1.bf16.msra.mxu1 %v1871_v12  ;;  %v2129_v26 = vrot.slane %v83_v23, %v87_v21  ;;  %v2131_v27 = vrot.slane %v83_v23, %v91_v22  ;;  %v2133_v29 = vrot.slane %v83_v23, %v95_v24 }
  0x2c   :  { %v2135_v30 = vrot.slane %v83_v23, %v99_v25 }
  0x2e   :  { %1574 = vmatmul.mubr.msk.bf16.vlgmr.msra.gmra.mxu0 %vm175_vm0, %v1872_v13  ;;  %1580 = vmatmul.mubr.msk.bf16.vlgmr.msra.gmra.mxu1 %vm175_vm0, %v1872_v13 }
  0x2f   :  { %236 = vmatprep.mubr.bf16.mxu0 %v2019_v0  ;;  %329 = vmatprep.mubr.bf16.mxu1 %v2019_v0 }
  0x36   :  { %1575 = vmatmul.mubr.msk.bf16.gmra.mxu0 %vm175_vm0, %v1873_v14  ;;  %1581 = vmatmul.mubr.msk.bf16.gmra.mxu1 %vm175_vm0, %v1873_v14 }
  0x37   :  { %246 = vmatprep.mubr.bf16.mxu0 %v2019_v0  ;;  %339 = vmatprep.mubr.bf16.mxu1 %v2019_v0 }
  0x3e   :  { %1576 = vmatmul.mubr.msk.bf16.gmra.mxu0 %vm175_vm0, %v1874_v15  ;;  %1582 = vmatmul.mubr.msk.bf16.gmra.mxu1 %vm175_vm0, %v1874_v15 }
  0x3f   :  { %256 = vmatprep.mubr.bf16.mxu0 %v2019_v0  ;;  %349 = vmatprep.mubr.bf16.mxu1 %v2019_v0 }
  0x46   :  { %1577 = vmatmul.mubr.msk.bf16.gmra.mxu0 %vm175_vm0, %v1875_v16  ;;  %1583 = vmatmul.mubr.msk.bf16.gmra.mxu1 %vm175_vm0, %v1875_v16 }
  0x47   :  { %266 = vmatprep.mubr.bf16.mxu0 %v2019_v0  ;;  %359 = vmatprep.mubr.bf16.mxu1 %v2019_v0 }
  0x4e   :  { %1578 = vmatmul.mubr.msk.bf16.gmra.mxu0 %vm175_vm0, %v1876_v17  ;;  %1584 = vmatmul.mubr.msk.bf16.gmra.mxu1 %vm175_vm0, %v1876_v17 }
  0x4f   :  { %276 = vmatprep.mubr.bf16.mxu0 %v2019_v0  ;;  %369 = vmatprep.mubr.bf16.mxu1 %v2019_v0 }
  0x56   :  { %1579 = vmatmul.mubr.msk.bf16.gmra.mxu0 %vm175_vm0, %v1877_v18  ;;  %1585 = vmatmul.mubr.msk.bf16.gmra.mxu1 %vm175_vm0, %v1877_v18 }
  0xee   :  { %v228_v28 = vpop.f32.mrf.mxu0  ;;  %v321_v31 = vpop.f32.mrf.mxu1 }
  0xef   :  { %v229_v33 = vadd.f32 %v228_v28, %v2129_v26  ;;  %v322_v36 = vadd.f32 %v321_v31, %v2133_v29 }
  0xf0   :  { %v230_v32 = vpop.f32.mrf.mxu0  ;;  %v323_v35 = vpop.f32.mrf.mxu1 }
  0xf1   :  { %v231_v34 = vadd.f32 %v230_v32, %v2131_v27  ;;  %v324_v37 = vadd.f32 %v323_v35, %v2135_v30 }
  0xf2   :  { %v232_v38 = vpop.f32.mrf.mxu0  ;;  %v325_v40 = vpop.f32.mrf.mxu1 }
  0xf3   :  { %v1664_v39 = vpack.c.bf16 %v231_v34, %v229_v33  ;;  %v1665_v41 = vpack.c.bf16 %v324_v37, %v322_v36  ;;  %v233_v43 = vadd.f32 %v232_v38, %v2129_v26  ;;  %v326_v46 = vadd.f32 %v325_v40, %v2133_v29 }
  0xf4   :  { %v234_v42 = vpop.f32.mrf.mxu0  ;;  %v327_v45 = vpop.f32.mrf.mxu1 }
  0xf5   :  { %524 = vst [vmem:[#allocation2] sm:$0xff] %v1664_v39  ;;  %v235_v44 = vadd.f32 %v234_v42, %v2131_v27  ;;  %525 = vst [vmem:[#allocation2 + $0x8] sm:$0xff] %v1665_v41  ;;  %v328_v47 = vadd.f32 %v327_v45, %v2135_v30 }
  0xf6   :  { %v238_v48 = vpop.f32.mrf.mxu0  ;;  %v331_v50 = vpop.f32.mrf.mxu1 }
  0xf7   :  { %v1666_v49 = vpack.c.bf16 %v235_v44, %v233_v43  ;;  %v1667_v51 = vpack.c.bf16 %v328_v47, %v326_v46  ;;  %v239_v53 = vadd.f32 %v238_v48, %v2129_v26  ;;  %v332_v56 = vadd.f32 %v331_v50, %v2133_v29 }
  0xf8   :  { %v240_v52 = vpop.f32.mrf.mxu0  ;;  %v333_v55 = vpop.f32.mrf.mxu1 }
  0xf9   :  { %526 = vst [vmem:[#allocation2 + $0x10] sm:$0xff] %v1666_v49  ;;  %v241_v54 = vadd.f32 %v240_v52, %v2131_v27  ;;  %527 = vst [vmem:[#allocation2 + $0x18] sm:$0xff] %v1667_v51  ;;  %v334_v57 = vadd.f32 %v333_v55, %v2135_v30 }
  0xfa   :  { %v242_v58 = vpop.f32.mrf.mxu0  ;;  %v335_v60 = vpop.f32.mrf.mxu1 }
  0xfb   :  { %v1668_v59 = vpack.c.bf16 %v241_v54, %v239_v53  ;;  %v1669_v61 = vpack.c.bf16 %v334_v57, %v332_v56  ;;  %v243_v63 = vadd.f32 %v242_v58, %v2129_v26  ;;  %v336_v5 = vadd.f32 %v335_v60, %v2133_v29 }
  0xfc   :  { %v244_v62 = vpop.f32.mrf.mxu0  ;;  %v337_v1 = vpop.f32.mrf.mxu1 }
  0xfd   :  { %528 = vst [vmem:[#allocation2 + $0x20] sm:$0xff] %v1668_v59  ;;  %v245_v0 = vadd.f32 %v244_v62, %v2131_v27  ;;  %529 = vst [vmem:[#allocation2 + $0x28] sm:$0xff] %v1669_v61  ;;  %v338_v6 = vadd.f32 %v337_v1, %v2135_v30 }
  0xfe   :  { %v248_v7 = vpop.f32.mrf.mxu0  ;;  %v341_v9 = vpop.f32.mrf.mxu1 }
  0xff   :  { %v1670_v8 = vpack.c.bf16 %v245_v0, %v243_v63  ;;  %v1671_v10 = vpack.c.bf16 %v338_v6, %v336_v5  ;;  %v249_v12 = vadd.f32 %v248_v7, %v2129_v26  ;;  %v342_v15 = vadd.f32 %v341_v9, %v2133_v29 }
 0x100   :  { %v250_v11 = vpop.f32.mrf.mxu0  ;;  %v343_v14 = vpop.f32.mrf.mxu1 }
 0x101   :  { %530 = vst [vmem:[#allocation2 + $0x30] sm:$0xff] %v1670_v8  ;;  %v251_v13 = vadd.f32 %v250_v11, %v2131_v27  ;;  %531 = vst [vmem:[#allocation2 + $0x38] sm:$0xff] %v1671_v10  ;;  %v344_v16 = vadd.f32 %v343_v14, %v2135_v30 }
 0x102   :  { %v252_v17 = vpop.f32.mrf.mxu0  ;;  %v345_v19 = vpop.f32.mrf.mxu1 }
 0x103   :  { %v1672_v18 = vpack.c.bf16 %v251_v13, %v249_v12  ;;  %v1673_v20 = vpack.c.bf16 %v344_v16, %v342_v15  ;;  %v253_v22 = vadd.f32 %v252_v17, %v2129_v26  ;;  %v346_v25 = vadd.f32 %v345_v19, %v2133_v29 }
 0x104   :  { %v254_v21 = vpop.f32.mrf.mxu0  ;;  %v347_v24 = vpop.f32.mrf.mxu1 }
 0x105   :  { %532 = vst [vmem:[#allocation2 + $0x40] sm:$0xff] %v1672_v18  ;;  %v255_v23 = vadd.f32 %v254_v21, %v2131_v27  ;;  %533 = vst [vmem:[#allocation2 + $0x48] sm:$0xff] %v1673_v20  ;;  %v348_v28 = vadd.f32 %v347_v24, %v2135_v30 }
 0x106   :  { %v258_v31 = vpop.f32.mrf.mxu0  ;;  %v351_v33 = vpop.f32.mrf.mxu1 }
 0x107   :  { %v1674_v32 = vpack.c.bf16 %v255_v23, %v253_v22  ;;  %v1675_v34 = vpack.c.bf16 %v348_v28, %v346_v25  ;;  %v259_v36 = vadd.f32 %v258_v31, %v2129_v26  ;;  %v352_v39 = vadd.f32 %v351_v33, %v2133_v29 }
 0x108   :  { %v260_v35 = vpop.f32.mrf.mxu0  ;;  %v353_v38 = vpop.f32.mrf.mxu1 }
 0x109   :  { %534 = vst [vmem:[#allocation2 + $0x50] sm:$0xff] %v1674_v32  ;;  %v261_v37 = vadd.f32 %v260_v35, %v2131_v27  ;;  %535 = vst [vmem:[#allocation2 + $0x58] sm:$0xff] %v1675_v34  ;;  %v354_v40 = vadd.f32 %v353_v38, %v2135_v30 }
 0x10a   :  { %v262_v41 = vpop.f32.mrf.mxu0  ;;  %v355_v43 = vpop.f32.mrf.mxu1 }
 0x10b   :  { %v1676_v42 = vpack.c.bf16 %v261_v37, %v259_v36  ;;  %v1677_v44 = vpack.c.bf16 %v354_v40, %v352_v39  ;;  %v263_v46 = vadd.f32 %v262_v41, %v2129_v26  ;;  %v356_v49 = vadd.f32 %v355_v43, %v2133_v29 }
 0x10c   :  { %v264_v45 = vpop.f32.mrf.mxu0  ;;  %v357_v48 = vpop.f32.mrf.mxu1 }
 0x10d   :  { %536 = vst [vmem:[#allocation2 + $0x60] sm:$0xff] %v1676_v42  ;;  %v265_v47 = vadd.f32 %v264_v45, %v2131_v27  ;;  %537 = vst [vmem:[#allocation2 + $0x68] sm:$0xff] %v1677_v44  ;;  %v358_v50 = vadd.f32 %v357_v48, %v2135_v30 }
 0x10e   :  { %v268_v51 = vpop.f32.mrf.mxu0  ;;  %v361_v53 = vpop.f32.mrf.mxu1 }
 0x10f   :  { %v1678_v52 = vpack.c.bf16 %v265_v47, %v263_v46  ;;  %v1679_v54 = vpack.c.bf16 %v358_v50, %v356_v49  ;;  %v269_v56 = vadd.f32 %v268_v51, %v2129_v26  ;;  %v362_v59 = vadd.f32 %v361_v53, %v2133_v29 }
 0x110   :  { %v270_v55 = vpop.f32.mrf.mxu0  ;;  %v363_v58 = vpop.f32.mrf.mxu1 }
 0x111   :  { %538 = vst [vmem:[#allocation2 + $0x70] sm:$0xff] %v1678_v52  ;;  %v271_v57 = vadd.f32 %v270_v55, %v2131_v27  ;;  %539 = vst [vmem:[#allocation2 + $0x78] sm:$0xff] %v1679_v54  ;;  %v364_v60 = vadd.f32 %v363_v58, %v2135_v30 }
 0x112   :  { %v272_v61 = vpop.f32.mrf.mxu0  ;;  %v365_v63 = vpop.f32.mrf.mxu1 }
 0x113   :  { %v1680_v62 = vpack.c.bf16 %v271_v57, %v269_v56  ;;  %v1681_v0 = vpack.c.bf16 %v364_v60, %v362_v59  ;;  %v273_v5 = vadd.f32 %v272_v61, %v2129_v26  ;;  %v366_v8 = vadd.f32 %v365_v63, %v2133_v29 }
 0x114   :  { %v274_v1 = vpop.f32.mrf.mxu0  ;;  %v367_v7 = vpop.f32.mrf.mxu1 }
 0x115   :  { %540 = vst [vmem:[#allocation2 + $0x80] sm:$0xff] %v1680_v62  ;;  %v275_v6 = vadd.f32 %v274_v1, %v2131_v27  ;;  %541 = vst [vmem:[#allocation2 + $0x88] sm:$0xff] %v1681_v0  ;;  %v368_v9 = vadd.f32 %v367_v7, %v2135_v30 }
 0x116   :  { %v278_v10 = vpop.f32.mrf.mxu0  ;;  %v371_v12 = vpop.f32.mrf.mxu1 }
 0x117   :  { %v1682_v11 = vpack.c.bf16 %v275_v6, %v273_v5  ;;  %v1683_v13 = vpack.c.bf16 %v368_v9, %v366_v8  ;;  %v279_v15 = vadd.f32 %v278_v10, %v2129_v26  ;;  %v372_v18 = vadd.f32 %v371_v12, %v2133_v29 }
 0x118   :  { %v280_v14 = vpop.f32.mrf.mxu0  ;;  %v373_v17 = vpop.f32.mrf.mxu1 }
 0x119   :  { %542 = vst [vmem:[#allocation2 + $0x90] sm:$0xff] %v1682_v11  ;;  %v281_v16 = vadd.f32 %v280_v14, %v2131_v27  ;;  %543 = vst [vmem:[#allocation2 + $0x98] sm:$0xff] %v1683_v13  ;;  %v374_v19 = vadd.f32 %v373_v17, %v2135_v30 }
 0x11a   :  { %v282_v20 = vpop.f32.mrf.mxu0  ;;  %v375_v22 = vpop.f32.mrf.mxu1 }
 0x11b   :  { %v1684_v21 = vpack.c.bf16 %v281_v16, %v279_v15  ;;  %v1685_v23 = vpack.c.bf16 %v374_v19, %v372_v18  ;;  %v283_v25 = vadd.f32 %v282_v20, %v2129_v26  ;;  %v376_v32 = vadd.f32 %v375_v22, %v2133_v29 }
 0x11c   :  { %v284_v24 = vpop.f32.mrf.mxu0  ;;  %v377_v31 = vpop.f32.mrf.mxu1 }
 0x11d   :  { %544 = vst [vmem:[#allocation2 + $0xa0] sm:$0xff] %v1684_v21  ;;  %v285_v28 = vadd.f32 %v284_v24, %v2131_v27  ;;  %545 = vst [vmem:[#allocation2 + $0xa8] sm:$0xff] %v1685_v23  ;;  %v378_v33 = vadd.f32 %v377_v31, %v2135_v30 }
 0x11f   :  { %v1686_v34 = vpack.c.bf16 %v285_v28, %v283_v25  ;;  %v1687_v35 = vpack.c.bf16 %v378_v33, %v376_v32 }
 0x121   :  { %546 = vst [vmem:[#allocation2 + $0xb0] sm:$0xff] %v1686_v34  ;;  %547 = vst [vmem:[#allocation2 + $0xb8] sm:$0xff] %v1687_v35 }
 0x122 LB: > { %s557_s2 = smul.u32 24, %s2012_s0  ;;  %vm578_vm1 = vcmask 64512   ;;  %s2020_s15 = smov 120   ;;  %v2207_v38 = vunpack.c.l.bf16 %v2069_v2  ;;  %vm648_vm2 = vcmask 195584   ;;  %vm695_vm3 = vcmask 1043456   ;;  %s2012_s0 = sphi %s2185_s0, %s556_s0  }
 0x123   : > { %s2021_s16 = smov 112   ;;  %vm762_vm4 = vcmask 60416   ;;  %s2022_s19 = smov 8   ;;  %vm963_vm5 = vcmask 126016   ;;  %vm1164_vm6 = vcmask 191616   ;;  %vm1365_vm7 = vcmask 257216  }
 0x124   : > { %s2191_s13 = sshra.s32 %s557_s2, 3  ;;  %s2023_s20 = smov 16  }
 0x125   : > { %s1688_s14 = sshll.u32 %s2191_s13, 4  ;;  %s1621_s17 = sshll.u32 %s2191_s13, 2 }
 0x126   : > { %s2194_s5 = scalar_lea.vmem [#allocation2], %s1688_s14  ;;  %s2243_s18 = scalar_lea.vmem [#allocation3], %s1621_s17 }
 0x127   : > { %s2024_s21 = smov 24   ;;  %s556_s0 = sadd.s32 1, %s2012_s0  }
 0x128   : > { %v1878_v26 = vld [vmem:[%s2194_s5 + $0x20] ss:$0 sps:$4 sm:$0xff]   ;;  %v2217_v52 = vld [vmem:[%s2194_s5 + $0x24] ss:$0 sps:$4 sm:$0xff]   ;;  %p553_p1 = scmp.ge.s32.totalorder %s556_s0, 4  }
 0x129   : > { %v1879_v27 = vld [vmem:[%s2194_s5] ss:$16 sps:$4 sm:$0xff]   ;;  %576 = vrot.lane.b32.xlu0 %v1878_v26, %s2020_s15  ;;  %v2228_v9 = vld [vmem:[%s2194_s5 + $0x4] ss:$16 sps:$4 sm:$0xff]  }
 0x12a   : > { %1749 = vmatprep.mubr.msk.bf16.mxu0 %vm578_vm1, %v1879_v27 }
 0x12d   : > { %574 = vrot.lane.b32.xlu0 %v1879_v27, %s2020_s15 }
 0x19b   : > { %v577_v29 = vpop.permute.xlu0 %576 }
 0x19c   : > { %1829 = vmatprep.subr.msk.bf16.mxu0 %vm578_vm1, %v577_v29  ;;  %v589_v30 = vsel %vm578_vm1, %v577_v29, 0 }
 0x19d   : > { %1746 = vmatpush3.bf16.xpose.msra.mxu0 %v589_v30 }
 0x19f   : > { %v575_v36 = vpop.permute.xlu0 %574 }
 0x1a0   : > { %1830 = vmatprep.subr.msk.bf16.mxu0 %vm578_vm1, %v575_v36  ;;  %v586_v37 = vsel %vm578_vm1, %v575_v36, 0 }
 0x1a5   : > { %1748 = vmatpush3.bf16.xpose.msra.mxu0 %v586_v37 }
 0x1ac   : > { %1750 = vmatmul.mubr.msk.bf16.vlgmr.msra.gmra.mxu0 %vm578_vm1, %v1878_v26 }
 0x26c   : > { %v1751_v39 = vpop.f32.mrf.mxu0 }
 0x26d   : > { %v641_v40 = vmul.f32 0.35355338, %v1751_v39 }
 0x26e   : > { %v625_v41 = vpop.f32.mrf.mxu0 }
 0x26f   : > { %v639_v42 = vmul.f32 0.35355338, %v625_v41  ;;  %v647_v43 = vadd.f32 %v2207_v38, %v641_v40 }
 0x270   : > { %v1752_v44 = vpop.f32.mrf.mxu0 }
 0x271   : > { %v645_v45 = vadd.f32 %v2071_v3, %v639_v42  ;;  %v655_v46 = vsel %vm648_vm2, %v647_v43, -inf }
 0x272   : > { %656 = vmax.xlane.f32.xlu0 %v655_v46  ;;  %v628_v47 = vpop.f32.mrf.mxu0 }
 0x273   : > { %v640_v48 = vmul.f32 0.35355338, %v628_v47  ;;  %v649_v49 = vsel %vm648_vm2, %v645_v45, -inf }
 0x274   : > { %650 = vmax.xlane.f32.xlu1 %v649_v49 }
 0x275   : > { %v646_v50 = vadd.f32 %v2073_v4, %v640_v48 }
 0x277   : > { %v652_v51 = vsel %vm648_vm2, %v646_v50, -inf }
 0x278   : > { %653 = vmax.xlane.f32.xlu1 %v652_v51 }
 0x288   : > { %779 = vrot.lane.b32.xlu0 %v2217_v52, %s2020_s15 }
 0x289   : > { %686 = vrot.lane.b32.xlu1 %v1878_v26, %s2021_s16 }
 0x2fb   : > { %v657_v53 = vpop.xlane.xlu0 %656 }
 0x2fc   : > { %v660_v54 = vsub.f32 %v647_v43, %v657_v53 }
 0x2fd   : > { %v651_v55 = vpop.xlane.xlu1 %650 }
 0x2fe   : > { %v665_v56 = vmul.f32 1.442695, %v660_v54  ;;  %v658_v57 = vsub.f32 %v645_v45, %v651_v55 }
 0x2ff   : > { %v780_v14 = vpop.permute.xlu0 %779 }
 0x300   : > { %1886 = vpow2.f32 %v665_v56  ;;  %v661_v58 = vmul.f32 1.442695, %v658_v57  ;;  %v791_v22 = vsel %vm578_vm1, %v780_v14, 0 }
 0x301   : > { %v654_v59 = vpop.xlane.xlu1 %653 }
 0x302   : > { %1888 = vpow2.f32 %v661_v58  ;;  %v659_v60 = vsub.f32 %v646_v50, %v654_v59 }
 0x304   : > { %v663_v61 = vmul.f32 1.442695, %v659_v60 }
 0x305   : > { %v687_v62 = vpop.permute.xlu1 %686 }
 0x306   : > { %1890 = vpow2.f32 %v663_v61  ;;  %1831 = vmatprep.subr.msk.bf16.mxu1 %vm695_vm3, %v687_v62  ;;  %v697_v63 = vsel %vm695_vm3, %v687_v62, 0 }
 0x307   : > { %1754 = vmatpush3.bf16.msra.mxu1 %v697_v63 }
 0x30d   : > { %v1887_v0 = vpop.eup %1886 }
 0x30e   : > { %v673_v1 = vsel %vm648_vm2, %v1887_v0, 0.0 }
 0x30f   : > { %v1889_v5 = vpop.eup %1888  ;;  %674 = vadd.xlane.f32.xlu1 %v673_v1  ;;  %v2264_v1 = vld [vmem:[%s2194_s5 + $0x8] ss:$16 sps:$4 sm:$0xff]  }
 0x310   : > { %v667_v6 = vsel %vm648_vm2, %v1889_v5, 0.0 }
 0x313   : > { %v1891_v7 = vpop.eup %1890  ;;  %668 = vadd.xlane.f32.xlu1 %v667_v6 }
 0x314   : > { %v670_v8 = vsel %vm648_vm2, %v1891_v7, 0.0 }
 0x317   : > { %671 = vadd.xlane.f32.xlu1 %v670_v8 }
 0x328   : > { %684 = vrot.lane.b32.xlu1 %v1879_v27, %s2021_s16 }
 0x32c   : > { %777 = vrot.lane.b32.xlu1 %v2228_v9, %s2020_s15 }
 0x398   : > { %v675_v10 = vpop.xlane.xlu1 %674 }
 0x399   : > { %1892 = vrcp.f32 %v675_v10 }
 0x39c   : > { %v669_v11 = vpop.xlane.xlu1 %668 }
 0x39d   : > { %1894 = vrcp.f32 %v669_v11 }
 0x3a0   : > { %v672_v12 = vpop.xlane.xlu1 %671 }
 0x3a1   : > { %1896 = vrcp.f32 %v672_v12 }
 0x3a4   : > { %v685_v13 = vpop.permute.xlu1 %684 }
 0x3a5   : > { %1755 = vmatprep.subr.bf16.mxu1 %v685_v13 }
 0x3a6   : > { %1756 = vmatpush3.bf16.msra.mxu1 %v685_v13  ;;  %v1893_v15 = vpop.eup %1892 }
 0x3a7   : > { %1832 = vmatprep.subr.msk.bf16.mxu1 %vm578_vm1, %v780_v14  ;;  %v681_v18 = vmul.f32 %v1893_v15, %v1887_v0  ;;  %v1882_v0 = vld [vmem:[%s2194_s5 + $0x28] ss:$0 sps:$4 sm:$0xff]  }
 0x3a8   : > { %v778_v24 = vpop.permute.xlu1 %777 }
 0x3a9   : > { %v683_v23 = vpack.c.bf16 %v681_v18, %v681_v18  ;;  %v788_v25 = vsel %vm578_vm1, %v778_v24, 0 }
 0x3aa   : > { %v1895_v16 = vpop.eup %1894 }
 0x3ab   : > { %v679_v19 = vmul.f32 %v1895_v16, %v1889_v5 }
 0x3ae   : > { %v1897_v17 = vpop.eup %1896 }
 0x3af   : > { %v680_v20 = vmul.f32 %v1897_v17, %v1891_v7 }
 0x3b1   : > { %v682_v21 = vpack.c.bf16 %v680_v20, %v679_v19 }
 0x3b3   : > { %1757 = vmatprep.mubr.msk.bf16.mxu1 %vm648_vm2, %v682_v21 }
 0x3b4   : > { %1758 = vmatmul.mubr.msk.bf16.vlgmr.msra.gmra.mxu1 %vm648_vm2, %v683_v23 }
 0x3b5   : > { %1762 = vmatpush3.bf16.xpose.msra.mxu1 %v791_v22  ;;  %1765 = vmatprep.mubr.msk.bf16.mxu1 %vm578_vm1, %v2228_v9 }
 0x3b6   : > { %1833 = vmatprep.subr.msk.bf16.mxu1 %vm578_vm1, %v778_v24 }
 0x3bd   : > { %1764 = vmatpush3.bf16.xpose.msra.mxu1 %v788_v25 }
 0x3c4   : > { %1766 = vmatmul.mubr.msk.bf16.vlgmr.msra.gmra.mxu1 %vm578_vm1, %v2217_v52 }
 0x474   : > { %v1759_v28 = vpop.f32.mrf.mxu1 }
 0x475   : > { %v1691_v31 = vpack.c.bf16 %v1759_v28, %v1759_v28 }
 0x476   : > { %v733_v32 = vpop.f32.mrf.mxu1 }
 0x477   : > { %765 = vst.msk [vmem:[%s2243_s18 + $0x8] sm:$0xf] %vm762_vm4, %v1691_v31  ;;  %v1689_v33 = vpack.c.bf16 %v733_v32, %v733_v32 }
 0x478   : > { %v1760_v34 = vpop.f32.mrf.mxu1 }
 0x479   : > { %763 = vst.msk [vmem:[%s2243_s18] sm:$0xf] %vm762_vm4, %v1689_v33 }
 0x47a   : > { %v736_v35 = vpop.f32.mrf.mxu1 }
 0x47b   : > { %v1690_v26 = vpack.c.bf16 %v736_v35, %v736_v35 }
 0x47d   : > { %764 = vst.msk [vmem:[%s2243_s18 + $0x4] sm:$0xf] %vm762_vm4, %v1690_v26 }
 0x484   : > { %v1767_v27 = vpop.f32.mrf.mxu1 }
 0x485   : > { %v843_v30 = vmul.f32 0.35355338, %v1767_v27 }
 0x486   : > { %v827_v29 = vpop.f32.mrf.mxu1 }
 0x487   : > { %v841_v36 = vmul.f32 0.35355338, %v827_v29  ;;  %v846_v43 = vadd.f32 %v843_v30, %v2207_v38 }
 0x488   : > { %v1768_v37 = vpop.f32.mrf.mxu1 }
 0x489   : > { %v844_v39 = vadd.f32 %v2071_v3, %v841_v36  ;;  %v853_v45 = vsel %vm648_vm2, %v846_v43, -inf }
 0x48a   : > { %v830_v40 = vpop.f32.mrf.mxu1 }
 0x48b   : > { %v842_v41 = vmul.f32 0.35355338, %v830_v40  ;;  %v847_v42 = vsel %vm648_vm2, %v844_v39, -inf }
 0x48c   : > { %848 = vmax.xlane.f32.xlu1 %v847_v42 }
 0x48d   : > { %v845_v44 = vadd.f32 %v2073_v4, %v842_v41 }
 0x48f   : > { %v850_v46 = vsel %vm648_vm2, %v845_v44, -inf }
 0x490   : > { %854 = vmax.xlane.f32.xlu1 %v853_v45  ;;  %851 = vmax.xlane.f32.xlu0 %v850_v46 }
 0x4a1   : > { %884 = vrot.lane.b32.xlu1 %v2217_v52, %s2021_s16 }
 0x515   : > { %v849_v47 = vpop.xlane.xlu1 %848 }
 0x516   : > { %v856_v48 = vsub.f32 %v844_v39, %v849_v47 }
 0x518   : > { %v859_v49 = vmul.f32 1.442695, %v856_v48 }
 0x519   : > { %v855_v50 = vpop.xlane.xlu1 %854  ;;  %v852_v51 = vpop.xlane.xlu0 %851 }
 0x51a   : > { %1898 = vpow2.f32 %v859_v49  ;;  %v858_v53 = vsub.f32 %v846_v43, %v855_v50  ;;  %v857_v54 = vsub.f32 %v845_v44, %v852_v51 }
 0x51c   : > { %v863_v55 = vmul.f32 1.442695, %v858_v53  ;;  %v861_v56 = vmul.f32 1.442695, %v857_v54 }
 0x51d   : > { %v885_v57 = vpop.permute.xlu1 %884 }
 0x51e   : > { %1900 = vpow2.f32 %v863_v55  ;;  %v894_v58 = vsel %vm695_vm3, %v885_v57, 0  ;;  %1834 = vmatprep.subr.msk.bf16.mxu0 %vm695_vm3, %v885_v57  ;;  %v2298_v57 = vld [vmem:[%s2194_s5 + $0x2c] ss:$0 sps:$4 sm:$0xff]  }
 0x51f   : > { %1902 = vpow2.f32 %v861_v56  ;;  %1770 = vmatpush3.bf16.msra.mxu0 %v894_v58  ;;  %v2303_v58 = vld [vmem:[%s2194_s5 + $0xc] ss:$16 sps:$4 sm:$0xff]  }
 0x527   : > { %v1899_v52 = vpop.eup %1898 }
 0x528   : > { %v865_v59 = vsel %vm648_vm2, %v1899_v52, 0.0 }
 0x529   : > { %866 = vadd.xlane.f32.xlu1 %v865_v59 }
 0x52b   : > { %v1901_v60 = vpop.eup %1900 }
 0x52c   : > { %v1903_v61 = vpop.eup %1902  ;;  %v871_v62 = vsel %vm648_vm2, %v1901_v60, 0.0 }
 0x52d   : > { %872 = vadd.xlane.f32.xlu0 %v871_v62  ;;  %v868_v63 = vsel %vm648_vm2, %v1903_v61, 0.0 }
 0x52e   : > { %869 = vadd.xlane.f32.xlu1 %v868_v63 }
 0x53f   : > { %980 = vrot.lane.b32.xlu1 %v1882_v0, %s2020_s15 }
 0x543   : > { %882 = vrot.lane.b32.xlu0 %v2228_v9, %s2021_s16  ;;  %978 = vrot.lane.b32.xlu1 %v2264_v1, %s2020_s15 }
 0x5b2   : > { %v867_v5 = vpop.xlane.xlu1 %866 }
 0x5b3   : > { %1904 = vrcp.f32 %v867_v5 }
 0x5b6   : > { %v873_v6 = vpop.xlane.xlu0 %872 }
 0x5b7   : > { %v870_v7 = vpop.xlane.xlu1 %869  ;;  %1906 = vrcp.f32 %v873_v6 }
 0x5b8   : > { %1908 = vrcp.f32 %v870_v7 }
 0x5ba   : > { %v883_v8 = vpop.permute.xlu0 %882 }
 0x5bb   : > { %1771 = vmatprep.subr.bf16.mxu0 %v883_v8  ;;  %v981_v10 = vpop.permute.xlu1 %980 }
 0x5bc   : > { %1772 = vmatpush3.bf16.msra.mxu0 %v883_v8  ;;  %v992_v18 = vsel %vm578_vm1, %v981_v10, 0 }
 0x5bd   : > { %1835 = vmatprep.subr.msk.bf16.mxu0 %vm578_vm1, %v981_v10 }
 0x5bf   : > { %v979_v19 = vpop.permute.xlu1 %978 }
 0x5c0   : > { %v1905_v11 = vpop.eup %1904  ;;  %v989_v20 = vsel %vm578_vm1, %v979_v19, 0 }
 0x5c1   : > { %v877_v9 = vmul.f32 %v1905_v11, %v1899_v52 }
 0x5c4   : > { %v1907_v12 = vpop.eup %1906 }
 0x5c5   : > { %v1909_v13 = vpop.eup %1908  ;;  %v879_v14 = vmul.f32 %v1907_v12, %v1901_v60 }
 0x5c6   : > { %v878_v15 = vmul.f32 %v1909_v13, %v1903_v61 }
 0x5c7   : > { %v881_v16 = vpack.c.bf16 %v879_v14, %v879_v14 }
 0x5c8   : > { %v880_v17 = vpack.c.bf16 %v878_v15, %v877_v9 }
 0x5ca   : > { %1773 = vmatprep.mubr.msk.bf16.mxu0 %vm648_vm2, %v880_v17 }
 0x5cb   : > { %1774 = vmatmul.mubr.msk.bf16.vlgmr.msra.gmra.mxu0 %vm648_vm2, %v881_v16 }
 0x5cc   : > { %1778 = vmatpush3.bf16.xpose.msra.mxu0 %v992_v18  ;;  %1781 = vmatprep.mubr.msk.bf16.mxu0 %vm578_vm1, %v2264_v1 }
 0x5cd   : > { %1836 = vmatprep.subr.msk.bf16.mxu0 %vm578_vm1, %v979_v19 }
 0x5d4   : > { %1780 = vmatpush3.bf16.xpose.msra.mxu0 %v989_v20 }
 0x5db   : > { %1782 = vmatmul.mubr.msk.bf16.vlgmr.msra.gmra.mxu0 %vm578_vm1, %v1882_v0 }
 0x68b   : > { %v2279_v21 = vpop.f32.mrf.mxu0 }
 0x68d   : > { %v2281_v22 = vpop.f32.mrf.mxu0 }
 0x68f   : > { %v1776_v23 = vpop.f32.mrf.mxu0 }
 0x691   : > { %v2283_v24 = vpop.f32.mrf.mxu0 }
 0x69b   : > { %v1783_v25 = vpop.f32.mrf.mxu0 }
 0x69c   : > { %v1044_v31 = vmul.f32 0.35355338, %v1783_v25 }
 0x69d   : > { %v1028_v28 = vpop.f32.mrf.mxu0 }
 0x69e   : > { %v1042_v32 = vmul.f32 0.35355338, %v1028_v28  ;;  %v1047_v29 = vadd.f32 %v1044_v31, %v2207_v38 }
 0x69f   : > { %v1784_v33 = vpop.f32.mrf.mxu0 }
 0x6a0   : > { %v1045_v34 = vadd.f32 %v2071_v3, %v1042_v32  ;;  %v1054_v36 = vsel %vm648_vm2, %v1047_v29, -inf }
 0x6a1   : > { %v1031_v35 = vpop.f32.mrf.mxu0 }
 0x6a2   : > { %v1043_v26 = vmul.f32 0.35355338, %v1031_v35  ;;  %v1048_v27 = vsel %vm648_vm2, %v1045_v34, -inf }
 0x6a3   : > { %1049 = vmax.xlane.f32.xlu0 %v1048_v27 }
 0x6a4   : > { %v1046_v30 = vadd.f32 %v2073_v4, %v1043_v26 }
 0x6a6   : > { %v1051_v37 = vsel %vm648_vm2, %v1046_v30, -inf }
 0x6a7   : > { %1055 = vmax.xlane.f32.xlu0 %v1054_v36  ;;  %1052 = vmax.xlane.f32.xlu1 %v1051_v37 }
 0x6b8   : > { %1085 = vrot.lane.b32.xlu1 %v1882_v0, %s2021_s16 }
 0x72c   : > { %v1050_v39 = vpop.xlane.xlu0 %1049 }
 0x72d   : > { %v1057_v40 = vsub.f32 %v1045_v34, %v1050_v39 }
 0x72f   : > { %v1060_v45 = vmul.f32 1.442695, %v1057_v40 }
 0x730   : > { %v1056_v41 = vpop.xlane.xlu0 %1055  ;;  %v1053_v42 = vpop.xlane.xlu1 %1052 }
 0x731   : > { %v1059_v43 = vsub.f32 %v1047_v29, %v1056_v41  ;;  %v1058_v44 = vsub.f32 %v1046_v30, %v1053_v42 }
 0x733   : > { %v1064_v46 = vmul.f32 1.442695, %v1059_v43  ;;  %v1062_v47 = vmul.f32 1.442695, %v1058_v44 }
 0x734   : > { %v1086_v48 = vpop.permute.xlu1 %1085 }
 0x735   : > { %1910 = vpow2.f32 %v1064_v46  ;;  %v1095_v49 = vsel %vm695_vm3, %v1086_v48, 0  ;;  %1837 = vmatprep.subr.msk.bf16.mxu1 %vm695_vm3, %v1086_v48  ;;  %v1692_v48 = vpack.c.bf16 %v2281_v22, %v2281_v22 }
 0x736   : > { %1912 = vpow2.f32 %v1062_v47  ;;  %1786 = vmatpush3.bf16.msra.mxu1 %v1095_v49  ;;  %v1693_v49 = vpack.c.bf16 %v2283_v24, %v2283_v24 }
 0x737   : > { %1914 = vpow2.f32 %v1060_v45 }
 0x742   : > { %v1911_v50 = vpop.eup %1910 }
 0x743   : > { %v1913_v51 = vpop.eup %1912  ;;  %v1072_v53 = vsel %vm648_vm2, %v1911_v50, 0.0 }
 0x744   : > { %v1915_v54 = vpop.eup %1914  ;;  %1073 = vadd.xlane.f32.xlu0 %v1072_v53  ;;  %v1069_v55 = vsel %vm648_vm2, %v1913_v51, 0.0 }
 0x745   : > { %1070 = vadd.xlane.f32.xlu1 %v1069_v55  ;;  %v1066_v56 = vsel %vm648_vm2, %v1915_v54, 0.0 }
 0x748   : > { %1067 = vadd.xlane.f32.xlu0 %v1066_v56 }
 0x756   : > { %1181 = vrot.lane.b32.xlu1 %v2298_v57, %s2020_s15 }
 0x75a   : > { %1179 = vrot.lane.b32.xlu1 %v2303_v58, %s2020_s15 }
 0x75e   : > { %1083 = vrot.lane.b32.xlu0 %v2264_v1, %s2021_s16 }
 0x7cd   : > { %v1074_v52 = vpop.xlane.xlu0 %1073 }
 0x7ce   : > { %v1071_v59 = vpop.xlane.xlu1 %1070  ;;  %1916 = vrcp.f32 %v1074_v52 }
 0x7cf   : > { %1918 = vrcp.f32 %v1071_v59 }
 0x7d1   : > { %v1068_v60 = vpop.xlane.xlu0 %1067 }
 0x7d2   : > { %1920 = vrcp.f32 %v1068_v60  ;;  %v1182_v62 = vpop.permute.xlu1 %1181 }
 0x7d3   : > { %v1193_v1 = vsel %vm578_vm1, %v1182_v62, 0 }
 0x7d5   : > { %v1084_v61 = vpop.permute.xlu0 %1083 }
 0x7d6   : > { %1787 = vmatprep.subr.bf16.mxu1 %v1084_v61  ;;  %v1180_v12 = vpop.permute.xlu1 %1179 }
 0x7d7   : > { %1788 = vmatpush3.bf16.msra.mxu1 %v1084_v61  ;;  %v1190_v13 = vsel %vm578_vm1, %v1180_v12, 0 }
 0x7d8   : > { %1838 = vmatprep.subr.msk.bf16.mxu1 %vm578_vm1, %v1182_v62 }
 0x7db   : > { %v1917_v63 = vpop.eup %1916 }
 0x7dc   : > { %v1919_v0 = vpop.eup %1918  ;;  %v1080_v6 = vmul.f32 %v1917_v63, %v1911_v50  ;;  %v1694_v50 = vpack.c.bf16 %v2279_v21, %v2279_v21 }
 0x7dd   : > { %v1079_v8 = vmul.f32 %v1919_v0, %v1913_v51 }
 0x7de   : > { %v1082_v11 = vpack.c.bf16 %v1080_v6, %v1080_v6 }
 0x7df   : > { %v1921_v5 = vpop.eup %1920 }
 0x7e0   : > { %v1078_v7 = vmul.f32 %v1921_v5, %v1915_v54 }
 0x7e2   : > { %v1081_v10 = vpack.c.bf16 %v1079_v8, %v1078_v7 }
 0x7e4   : > { %1789 = vmatprep.mubr.msk.bf16.mxu1 %vm648_vm2, %v1081_v10 }
 0x7e5   : > { %1790 = vmatmul.mubr.msk.bf16.vlgmr.msra.gmra.mxu1 %vm648_vm2, %v1082_v11 }
 0x7e6   : > { %1794 = vmatpush3.bf16.xpose.msra.mxu1 %v1193_v1  ;;  %1797 = vmatprep.mubr.msk.bf16.mxu1 %vm578_vm1, %v2303_v58 }
 0x7e7   : > { %1839 = vmatprep.subr.msk.bf16.mxu1 %vm578_vm1, %v1180_v12 }
 0x7ee   : > { %1796 = vmatpush3.bf16.xpose.msra.mxu1 %v1190_v13 }
 0x7f5   : > { %1798 = vmatmul.mubr.msk.bf16.vlgmr.msra.gmra.mxu1 %vm578_vm1, %v2298_v57 }
 0x8a5   : > { %v1791_v14 = vpop.f32.mrf.mxu1 }
 0x8a6   : > { %v1697_v53 = vpack.c.bf16 %v1791_v14, %v1791_v14 }
 0x8a7   : > { %v1131_v9 = vpop.f32.mrf.mxu1 }
 0x8a8   : > { %v1695_v51 = vpack.c.bf16 %v1131_v9, %v1131_v9 }
 0x8a9   : > { %v1792_v15 = vpop.f32.mrf.mxu1 }
 0x8ab   : > { %v1134_v16 = vpop.f32.mrf.mxu1 }
 0x8ac   : > { %v1696_v54 = vpack.c.bf16 %v1134_v16, %v1134_v16 }
 0x8b5   : > { %v1799_v17 = vpop.f32.mrf.mxu1 }
 0x8b6   : > { %v1245_v19 = vmul.f32 0.35355338, %v1799_v17 }
 0x8b7   : > { %v1229_v18 = vpop.f32.mrf.mxu1 }
 0x8b8   : > { %v1243_v20 = vmul.f32 0.35355338, %v1229_v18  ;;  %v1248_v33 = vadd.f32 %v1245_v19, %v2207_v38 }
 0x8b9   : > { %v1800_v23 = vpop.f32.mrf.mxu1 }
 0x8ba   : > { %v1246_v25 = vadd.f32 %v2071_v3, %v1243_v20  ;;  %v1255_v35 = vsel %vm648_vm2, %v1248_v33, -inf  ;;  %v1934_v20 = vld [vmem:[#allocation6 + $0x8] sm:$0xff] (%p553_p1)   ;;  %v1935_v23 = vld [vmem:[#allocation6] sm:$0xff] (%p553_p1)  }
 0x8bb   : > { %v1232_v28 = vpop.f32.mrf.mxu1  ;;  %1825 = vmatprep.subr.bf16.mxu1 (%p553_p1), %v1934_v20  ;;  %v1649_v3 = vld [vmem:[%s2415_s4] ss:$0 sm:$0xff] (%p553_p1) }
 0x8bc   : > { %v1244_v31 = vmul.f32 0.35355338, %v1232_v28  ;;  %v1249_v32 = vsel %vm648_vm2, %v1246_v25, -inf  ;;  %1827 = vmatpush3.bf16.msra.mxu1 (%p553_p1), %v1934_v20 }
 0x8bd   : > { %1250 = vmax.xlane.f32.xlu0 %v1249_v32  ;;  %1826 = vmatprep.subr.bf16.mxu1 (%p553_p1), %v1935_v23 }
 0x8be   : > { %v1247_v34 = vadd.f32 %v2073_v4, %v1244_v31 }
 0x8c0   : > { %v1252_v26 = vsel %vm648_vm2, %v1247_v34, -inf  ;;  %1828 = vmatpush3.bf16.msra.mxu1 (%p553_p1), %v1935_v23 }
 0x8c1   : > { %1256 = vmax.xlane.f32.xlu0 %v1255_v35  ;;  %1253 = vmax.xlane.f32.xlu1 %v1252_v26 }
 0x946   : > { %v1251_v27 = vpop.xlane.xlu0 %1250 }
 0x947   : > { %v1258_v29 = vsub.f32 %v1246_v25, %v1251_v27 }
 0x949   : > { %v1261_v40 = vmul.f32 1.442695, %v1258_v29 }
 0x94a   : > { %v1257_v30 = vpop.xlane.xlu0 %1256  ;;  %v1254_v36 = vpop.xlane.xlu1 %1253 }
 0x94b   : > { %v1260_v37 = vsub.f32 %v1248_v33, %v1257_v30  ;;  %v1259_v39 = vsub.f32 %v1247_v34, %v1254_v36 }
 0x94d   : > { %v1265_v41 = vmul.f32 1.442695, %v1260_v37  ;;  %v1263_v42 = vmul.f32 1.442695, %v1259_v39 }
 0x94f   : > { %1922 = vpow2.f32 %v1265_v41 }
 0x950   : > { %1924 = vpow2.f32 %v1263_v42 }
 0x951   : > { %1926 = vpow2.f32 %v1261_v40 }
 0x95c   : > { %v1923_v38 = vpop.eup %1922 }
 0x95d   : > { %v1925_v43 = vpop.eup %1924  ;;  %v1273_v44 = vsel %vm648_vm2, %v1923_v38, 0.0 }
 0x95e   : > { %v1927_v45 = vpop.eup %1926  ;;  %1274 = vadd.xlane.f32.xlu0 %v1273_v44  ;;  %v1270_v46 = vsel %vm648_vm2, %v1925_v43, 0.0 }
 0x95f   : > { %1271 = vadd.xlane.f32.xlu1 %v1270_v46  ;;  %v1267_v47 = vsel %vm648_vm2, %v1927_v45, 0.0 }
 0x962   : > { %1268 = vadd.xlane.f32.xlu0 %v1267_v47 }
 0x970   : > { %1286 = vrot.lane.b32.xlu1 %v2298_v57, %s2021_s16 }
 0x974   : > { %954 = vrot.lane.b32.xlu1 %v1692_v48, %s2022_s19 }
 0x978   : > { %956 = vrot.lane.b32.xlu1 %v1693_v49, %s2022_s19  ;;  %1284 = vrot.lane.b32.xlu0 %v2303_v58, %s2021_s16 }
 0x97c   : > { %1155 = vrot.lane.b32.xlu1 %v1695_v51, %s2023_s20  ;;  %958 = vrot.lane.b32.xlu0 %v1694_v50, %s2022_s19 }
 0x980   : > { %1159 = vrot.lane.b32.xlu1 %v1697_v53, %s2023_s20  ;;  %1157 = vrot.lane.b32.xlu0 %v1696_v54, %s2023_s20 }
 0x9e7   : > { %v1275_v22 = vpop.xlane.xlu0 %1274 }
 0x9e8   : > { %v1272_v55 = vpop.xlane.xlu1 %1271  ;;  %1928 = vrcp.f32 %v1275_v22 }
 0x9e9   : > { %1930 = vrcp.f32 %v1272_v55 }
 0x9eb   : > { %v1269_v24 = vpop.xlane.xlu0 %1268 }
 0x9ec   : > { %1932 = vrcp.f32 %v1269_v24  ;;  %v1287_v56 = vpop.permute.xlu1 %1286 }
 0x9ed   : > { %v1296_v21 = vsel %vm695_vm3, %v1287_v56, 0  ;;  %1840 = vmatprep.subr.msk.bf16.mxu0 %vm695_vm3, %v1287_v56 }
 0x9ee   : > { %1802 = vmatpush3.bf16.msra.mxu0 %v1296_v21 }
 0x9ef   : > { %v1285_v57 = vpop.permute.xlu0 %1284 }
 0x9f0   : > { %v955_v58 = vpop.permute.xlu1 %954  ;;  %1803 = vmatprep.subr.bf16.mxu0 %v1285_v57 }
 0x9f1   : > { %964 = vst.msk [vmem:[%s2243_s18] sm:$0xf] %vm963_vm5, %v955_v58 }
 0x9f2   : > { %1804 = vmatpush3.bf16.msra.mxu0 %v1285_v57 }
 0x9f3   : > { %v959_v52 = vpop.permute.xlu0 %958  ;;  %1809 = vmatprep.subr.bf16.mxu0 (%p553_p1), %v1934_v20 }
 0x9f4   : > { %966 = vst.msk [vmem:[%s2243_s18 + $0x8] sm:$0xf] %vm963_vm5, %v959_v52  ;;  %v957_v59 = vpop.permute.xlu1 %956 }
 0x9f5   : > { %965 = vst.msk [vmem:[%s2243_s18 + $0x4] sm:$0xf] %vm963_vm5, %v957_v59  ;;  %v1929_v60 = vpop.eup %1928 }
 0x9f6   : > { %v1931_v61 = vpop.eup %1930  ;;  %v1281_v5 = vmul.f32 %v1929_v60, %v1923_v38 }
 0x9f7   : > { %v1158_v62 = vpop.permute.xlu0 %1157  ;;  %v1280_v7 = vmul.f32 %v1931_v61, %v1925_v43 }
 0x9f8   : > { %1166 = vst.msk [vmem:[%s2243_s18 + $0x4] sm:$0xf] %vm1164_vm6, %v1158_v62  ;;  %v1156_v63 = vpop.permute.xlu1 %1155  ;;  %v1283_v1 = vpack.c.bf16 %v1281_v5, %v1281_v5 }
 0x9f9   : > { %v1933_v0 = vpop.eup %1932  ;;  %1165 = vst.msk [vmem:[%s2243_s18] sm:$0xf] %vm1164_vm6, %v1156_v63 }
 0x9fa   : > { %v1279_v6 = vmul.f32 %v1933_v0, %v1927_v45 }
 0x9fc   : > { %v1160_v8 = vpop.permute.xlu1 %1159  ;;  %v1282_v10 = vpack.c.bf16 %v1280_v7, %v1279_v6 }
 0x9fd   : > { %1167 = vst.msk [vmem:[%s2243_s18 + $0x8] sm:$0xf] %vm1164_vm6, %v1160_v8 }
 0x9fe   : > { %1805 = vmatprep.mubr.msk.bf16.mxu0 %vm648_vm2, %v1282_v10 }
 0x9ff   : > { %1806 = vmatmul.mubr.msk.bf16.vlgmr.msra.gmra.mxu0 %vm648_vm2, %v1283_v1 }
 0xa00   :  { %1810 = vmatpush3.bf16.msra.mxu0 (%p553_p1), %v1934_v20 }
 0xa01   :  { %1811 = vmatprep.subr.bf16.mxu0 (%p553_p1), %v1935_v23 }
 0xa04   :  { %1812 = vmatpush3.bf16.msra.mxu0 (%p553_p1), %v1935_v23 }
 0xabf   : > { %v1807_v11 = vpop.f32.mrf.mxu0 }
 0xac0   : > { %v1700_v15 = vpack.c.bf16 %v1807_v11, %v1807_v11 }
 0xac1   : > { %v1332_v12 = vpop.f32.mrf.mxu0 }
 0xac2   : > { %v1698_v13 = vpack.c.bf16 %v1332_v12, %v1332_v12 }
 0xac3   : > { %v1808_v14 = vpop.f32.mrf.mxu0 }
 0xac4   : > { %1356 = vrot.lane.b32.xlu0 %v1698_v13, %s2024_s21 }
 0xac5   : > { %v1335_v9 = vpop.f32.mrf.mxu0 }
 0xac6   : > { %v1699_v16 = vpack.c.bf16 %v1335_v9, %v1335_v9 }
 0xac8   : > { %1360 = vrot.lane.b32.xlu0 %v1700_v15, %s2024_s21  ;;  %1358 = vrot.lane.b32.xlu1 %v1699_v16, %s2024_s21 }
 0xb36   : > { %v1357_v17 = vpop.permute.xlu0 %1356 }
 0xb37   : > { %1366 = vst.msk [vmem:[%s2243_s18] sm:$0xf] %vm1365_vm7, %v1357_v17  ;;  %555 = sbr.rel (!%p553_p1) target bundleno = 290 (0x122), region = 65 }
 0xb3a   : > { %v1361_v18 = vpop.permute.xlu0 %1360  ;;  %v1359_v19 = vpop.permute.xlu1 %1358 }
 0xb3b   : > { %1368 = vst.msk [vmem:[%s2243_s18 + $0x8] sm:$0xf] %vm1365_vm7, %v1361_v18  ;;  %1367 = vst.msk [vmem:[%s2243_s18 + $0x4] sm:$0xf] %vm1365_vm7, %v1359_v19 }
 0xb42   :  { %v1936_v25 = vld [vmem:[#allocation3 + $0x10] sm:$0xff]   ;;  %v1938_v28 = vld [vmem:[#allocation3] sm:$0xff]   ;;  %v1937_v31 = vld [vmem:[#allocation3 + $0x18] sm:$0xff]  }
 0xb43   :  { %1817 = vmatprep.mubr.msk.bf16.mxu1 %vm175_vm0, %v1936_v25  ;;  %1813 = vmatprep.mubr.msk.bf16.mxu0 %vm175_vm0, %v1938_v28  ;;  %v1939_v32 = vld [vmem:[#allocation3 + $0x8] sm:$0xff]   ;;  %v1940_v33 = vld [vmem:[#allocation3 + $0x20] sm:$0xff]  }
 0xb44   :  { %1818 = vmatmul.mubr.msk.bf16.vlgmr.msra.gmra.mxu1 %vm175_vm0, %v1937_v31  ;;  %1814 = vmatmul.mubr.msk.bf16.vlgmr.msra.gmra.mxu0 %vm175_vm0, %v1939_v32  ;;  %v1941_v2 = vld [vmem:[#allocation3 + $0x28] sm:$0xff]  }
 0xb45   :  { %1821 = vmatprep.mubr.msk.bf16.mxu1 %vm175_vm0, %v1940_v33 }
 0xb4c   :  { %1822 = vmatmul.mubr.msk.bf16.gmra.mxu1 %vm175_vm0, %v1941_v2 }
 0xc04   :  { %v1819_v4 = vpop.f32.mrf.mxu1  ;;  %v1815_v34 = vpop.f32.mrf.mxu0 }
 0xc05   :  { %v1511_v35 = vadd.f32 %v1819_v4, %v1649_v3  ;;  %v1495_v26 = vadd.f32 %v1815_v34, %v1649_v3 }
 0xc06   :  { %v1502_v27 = vpop.f32.mrf.mxu1  ;;  %v1486_v29 = vpop.f32.mrf.mxu0 }
 0xc07   :  { %1539 = vst.msk [vmem:[%s2417_s6 + $0x30] sm:$0xff] %vm175_vm0, %v1511_v35  ;;  %1535 = vst.msk [vmem:[%s2417_s6 + $0x10] sm:$0xff] %vm175_vm0, %v1495_v26  ;;  %v1503_v30 = vadd.f32 %v1649_v3, %v1502_v27  ;;  %v1487_v36 = vadd.f32 %v1649_v3, %v1486_v29 }
 0xc08   :  { %v1820_v37 = vpop.f32.mrf.mxu1  ;;  %v1816_v39 = vpop.f32.mrf.mxu0 }
 0xc09   :  { %1537 = vst.msk [vmem:[%s2417_s6 + $0x20] sm:$0xff] %vm175_vm0, %v1503_v30  ;;  %1533 = vst.msk [vmem:[%s2417_s6] sm:$0xff] %vm175_vm0, %v1487_v36  ;;  %v1514_v40 = vadd.f32 %v1820_v37, %v1649_v3  ;;  %v1498_v41 = vadd.f32 %v1816_v39, %v1649_v3 }
 0xc0a   :  { %v1505_v42 = vpop.f32.mrf.mxu1  ;;  %v1489_v38 = vpop.f32.mrf.mxu0 }
 0xc0b   :  { %1540 = vst.msk [vmem:[%s2417_s6 + $0x38] sm:$0xff] %vm175_vm0, %v1514_v40  ;;  %1536 = vst.msk [vmem:[%s2417_s6 + $0x18] sm:$0xff] %vm175_vm0, %v1498_v41  ;;  %v1506_v43 = vadd.f32 %v1649_v3, %v1505_v42  ;;  %v1490_v44 = vadd.f32 %v1649_v3, %v1489_v38 }
 0xc0c   :  { %v1823_v45 = vpop.f32.mrf.mxu1 }
 0xc0d   :  { %1538 = vst.msk [vmem:[%s2417_s6 + $0x28] sm:$0xff] %vm175_vm0, %v1506_v43  ;;  %1534 = vst.msk [vmem:[%s2417_s6 + $0x8] sm:$0xff] %vm175_vm0, %v1490_v44  ;;  %v1527_v46 = vadd.f32 %v1823_v45, %v1649_v3 }
 0xc0e   :  { %v1518_v47 = vpop.f32.mrf.mxu1 }
 0xc0f   :  { %1543 = vst.msk [vmem:[%s2417_s6 + $0x50] sm:$0xff] %vm175_vm0, %v1527_v46  ;;  %v1519_v48 = vadd.f32 %v1649_v3, %v1518_v47 }
 0xc10   :  { %v1824_v49 = vpop.f32.mrf.mxu1 }
 0xc11   :  { %1541 = vst.msk [vmem:[%s2417_s6 + $0x40] sm:$0xff] %vm175_vm0, %v1519_v48  ;;  %v1530_v50 = vadd.f32 %v1824_v49, %v1649_v3 }
 0xc12   :  { %v1521_v51 = vpop.f32.mrf.mxu1 }
 0xc13   :  { %1544 = vst.msk [vmem:[%s2417_s6 + $0x58] sm:$0xff] %vm175_vm0, %v1530_v50  ;;  %v1522_v53 = vadd.f32 %v1649_v3, %v1521_v51 }
 0xc15   :  { %1542 = vst.msk [vmem:[%s2417_s6 + $0x48] sm:$0xff] %vm175_vm0, %v1522_v53 }
 0xc16   :  { %1549 = vsyncpa [#allocation5], 1 }
 0xc17   :  { %1550 = vsyncpa [#allocation7], 1 }

</bundles_post_ra>
